<compile_context>
chip_gen: v6e
topology: v6e:2x2x1
jax: 0.10.0
libtpu: 0.0.40
codegen_flags: <defaults>
</compile_context>

<pallas_src>
import math
import jax
import jax.numpy as jnp
from jax.experimental import pallas as pl
from jax.experimental.pallas import tpu as pltpu

# Small synthetic BertConfig (hidden size chosen lane-dense: H = 128).
B, S = 2, 8                  # batch, sequence length
H = 128                      # hidden_size  (multiple of 128 -> lane dense)
NH, DH = 4, 32               # num_attention_heads, attention_head_size
I = 512                      # intermediate_size
L = 2                        # num_hidden_layers
EPS = 1e-12                  # layer_norm_eps
MXU_DTYPE = jnp.bfloat16     # matmul operand dtype (f32 accumulation)

# Row tiling of the (B*S, H) hidden slab.  One grid step processes
# BATCHES_PER_TILE full sequences (= ROWS rows).  Toy shapes: 1 sequence/tile so
# the "parallel" row axis has extent 2 (balanced across v7x's 2 TensorCores).
# At production shapes raise this so ROWS >= ~256-1024 (MXU-bound, weight DMA
# amortized, ~0.35 us/grid-step amortized).
BATCHES_PER_TILE = 1
ROWS = BATCHES_PER_TILE * S
assert B % BATCHES_PER_TILE == 0
NUM_ROW_TILES = B // BATCHES_PER_TILE


def _layernorm(x, gamma, beta):
    mu = jnp.mean(x, axis=-1, keepdims=True)
    var = jnp.mean((x - mu) ** 2, axis=-1, keepdims=True)
    return (x - mu) * jax.lax.rsqrt(var + EPS) * gamma + beta


def _gelu(x):
    # Original BERT gelu: x * 0.5 * (1 + erf(x / sqrt(2)))
    # TODO(synk): the tanh 'gelu_new' form would move work from the VPU erf
    #             polynomial to the (idle) EUP, but changes module numerics.
    return x * 0.5 * (1.0 + jax.lax.erf(x * (1.0 / math.sqrt(2.0))))


def bert_encoder_kernel(x_ref, mask_ref,
                        wqkv_ref, bqkv_ref, wo_ref, bo_ref, ln1g_ref, ln1b_ref,
                        wi_ref, bi_ref, wo2_ref, bo2_ref, ln2g_ref, ln2b_ref,
                        out_ref, qkv_scr, ctx_scr):
    l = pl.program_id(1)

    # out_ref's block index is constant along the layer axis, so its VMEM buffer
    # persists across layers and doubles as the carried hidden state.
    # (Valid only while the layer axis is innermost and "arbitrary".)
    @pl.when(l == 0)
    def _():
        out_ref[...] = x_ref[...]

    h = out_ref[...]                                   # (ROWS, H) f32
    h16 = h.astype(MXU_DTYPE)

    # --- BertSelfAttention: fused, lane-dense QKV projection (one MXU matmul,
    #     N = 3H = 384) written to a VMEM scratch so heads can be gathered by
    #     cheap static loads (no sublane<->head transposes, no NH broadcast). ---
    qkv_scr[...] = (jnp.dot(h16, wqkv_ref[...], preferred_element_type=jnp.float32)
                    + bqkv_ref[...])

    scale = 1.0 / math.sqrt(DH)                        # folded onto Q, not scores
    mask = mask_ref[...]                               # (BATCHES_PER_TILE, 1, S)

    # Attention per sequence in the tile (sequences never attend across batches).
    for b in range(BATCHES_PER_TILE):
        r0 = b * S
        qh = jnp.stack([qkv_scr[pl.ds(r0, S), pl.ds(n * DH, DH)]
                        for n in range(NH)], axis=0)           # (NH, S, DH)
        kh = jnp.stack([qkv_scr[pl.ds(r0, S), pl.ds(H + n * DH, DH)]
                        for n in range(NH)], axis=0)
        vh = jnp.stack([qkv_scr[pl.ds(r0, S), pl.ds(2 * H + n * DH, DH)]
                        for n in range(NH)], axis=0)

        scores = jnp.einsum('nqd,nkd->nqk',
                            (qh * scale).astype(MXU_DTYPE), kh.astype(MXU_DTYPE),
                            preferred_element_type=jnp.float32)  # (NH, S, S)
        scores = scores + mask[b]                                # (1, S) over keys
        m = jnp.max(scores, axis=-1, keepdims=True)
        p = jnp.exp(scores - m)
        p = p * pl.reciprocal(jnp.sum(p, axis=-1, keepdims=True), approx=True)

        ctx = jnp.einsum('nqk,nkd->nqd', p.astype(MXU_DTYPE), vh.astype(MXU_DTYPE),
                         preferred_element_type=jnp.float32)     # (NH, S, DH)
        # Merge heads by writing each (S, DH) block at its lane offset.
        for n in range(NH):
            ctx_scr[pl.ds(r0, S), pl.ds(n * DH, DH)] = ctx[n]

    # --- BertSelfOutput: single lane-dense (ROWS,H)x(H,H) projection + residual + LN ---
    attn = (jnp.dot(ctx_scr[...].astype(MXU_DTYPE), wo_ref[...],
                    preferred_element_type=jnp.float32) + bo_ref[...])
    attn = _layernorm(attn + h, ln1g_ref[...], ln1b_ref[...])    # (ROWS, H) f32

    # --- BertIntermediate: dense + erf-gelu ---
    inter = _gelu(jnp.dot(attn.astype(MXU_DTYPE), wi_ref[...],
                          preferred_element_type=jnp.float32) + bi_ref[...])

    # --- BertOutput: dense + residual + LN ---
    ffn = (jnp.dot(inter.astype(MXU_DTYPE), wo2_ref[...],
                   preferred_element_type=jnp.float32) + bo2_ref[...])
    out_ref[...] = _layernorm(ffn + attn, ln2g_ref[...], ln2b_ref[...])


def _layer_spec(arr):
    """BlockSpec selecting layer l of a weight stacked along the leading L axis.

    The leading dim is pl.Squeezed(), so the kernel sees the weight directly."""
    rest = arr.ndim - 1
    return pl.BlockSpec((pl.Squeezed(),) + tuple(arr.shape[1:]),
                        lambda r, l, _rest=rest: (l,) + (0,) * _rest)


def bert_encoder(hidden_states, attention_mask, params):
    """hidden_states: (B,S,H) f32; attention_mask: (B,1,S) additive mask;
    params: list of 16 stacked arrays (see make_params)."""
    (wq, bq, wk, bk, wv, bv, wo, bo, g1, b1,
     wi, bi, wo2, bo2, g2, b2) = params

    # Host-side layout plumbing only (no compute): fused QKV weight/bias,
    # 2-D biases / LN params, lane-dense (B*S, H) hidden slab.
    wqkv = jnp.concatenate([wq, wk, wv], axis=-1)                 # (L, H, 3H) bf16
    bqkv = jnp.concatenate([bq, bk, bv], axis=-1).reshape(L, 1, 3 * H)

    kparams = [
        wqkv, bqkv,
        wo, bo.reshape(L, 1, H),
        g1.reshape(L, 1, H), b1.reshape(L, 1, H),
        wi, bi.reshape(L, 1, I),
        wo2, bo2.reshape(L, 1, H),
        g2.reshape(L, 1, H), b2.reshape(L, 1, H),
    ]

    x2 = hidden_states.reshape(B * S, H)

    in_specs = [
        pl.BlockSpec((ROWS, H), lambda r, l: (r, 0)),               # hidden row tile
        pl.BlockSpec((BATCHES_PER_TILE, 1, S), lambda r, l: (r, 0, 0)),  # additive mask
    ] + [_layer_spec(p) for p in kparams]

    out = pl.pallas_call(
        bert_encoder_kernel,
        out_shape=jax.ShapeDtypeStruct((B * S, H), jnp.float32),
        grid_spec=pltpu.PrefetchScalarGridSpec(
            num_scalar_prefetch=0,
            grid=(NUM_ROW_TILES, L),        # rows parallel, layers sequential (carry)
            in_specs=in_specs,
            out_specs=pl.BlockSpec((ROWS, H), lambda r, l: (r, 0)),
            scratch_shapes=[
                pltpu.VMEM((ROWS, 3 * H), jnp.float32),   # fused QKV activations
                pltpu.VMEM((ROWS, H), jnp.float32),       # merged attention context
            ]),
        compiler_params=pltpu.CompilerParams(
            # NOTE (real BERT sizes): raise vmem_limit_bytes on v5e/v6e (~64-100 MiB);
            # on v7x (64 MiB physical) set it explicitly and K-tile the FFN weights
            # over I instead of pulling them whole per layer.
            dimension_semantics=("parallel", "arbitrary")),
    )(x2, attention_mask, *kparams)
    return out.reshape(B, S, H)


def reference(hidden_states, attention_mask, params):
    """Pure-JAX reference mirroring the PyTorch BertEncoder forward (same bf16 MXU
    operand precision as the kernel, f32 accumulation and f32 elementwise math)."""
    def mm(a, w):
        return jnp.dot(a.astype(MXU_DTYPE), w, preferred_element_type=jnp.float32)

    h = hidden_states
    mask4 = attention_mask[:, :, None, :]                 # (B,1,1,S)
    scale = 1.0 / math.sqrt(DH)
    for l in range(L):
        (wq, bq, wk, bk, wv, bv, wo, bo, g1, b1,
         wi, bi, wo2, bo2, g2, b2) = [p[l] for p in params]
        q = mm(h, wq) + bq
        k = mm(h, wk) + bk
        v = mm(h, wv) + bv
        qh = q.reshape(B, S, NH, DH).transpose(0, 2, 1, 3)
        kh = k.reshape(B, S, NH, DH).transpose(0, 2, 1, 3)
        vh = v.reshape(B, S, NH, DH).transpose(0, 2, 1, 3)
        scores = jnp.einsum('bnqd,bnkd->bnqk', qh.astype(MXU_DTYPE), kh.astype(MXU_DTYPE),
                            preferred_element_type=jnp.float32) * scale + mask4
        probs = jax.nn.softmax(scores, axis=-1)
        ctx = jnp.einsum('bnqk,bnkd->bnqd', probs.astype(MXU_DTYPE), vh.astype(MXU_DTYPE),
                         preferred_element_type=jnp.float32)
        ctx = ctx.transpose(0, 2, 1, 3).reshape(B, S, H)
        attn = _layernorm(mm(ctx, wo) + bo + h, g1, b1)
        inter = _gelu(mm(attn, wi) + bi)
        h = _layernorm(mm(inter, wo2) + bo2 + attn, g2, b2)
    return h


def make_params(key):
    """Deterministic synthetic weights.  nn.Linear(in, out) stored as (in, out).
    Weights bf16 (MXU operands), biases / LayerNorm params f32."""
    keys = jax.random.split(key, 12)
    std = 0.02

    def w(k, shape):
        return (jax.random.normal(k, shape, jnp.float32) * std).astype(MXU_DTYPE)

    def vec(k, shape):
        return jax.random.normal(k, shape, jnp.float32) * std

    wq = w(keys[0], (L, H, H));   bq = vec(keys[1], (L, H))
    wk = w(keys[2], (L, H, H));   bk = vec(keys[3], (L, H))
    wv = w(keys[4], (L, H, H));   bv = vec(keys[5], (L, H))
    wo = w(keys[6], (L, H, H));   bo = vec(keys[7], (L, H))
    g1 = jnp.ones((L, H), jnp.float32); b1 = jnp.zeros((L, H), jnp.float32)
    wi = w(keys[8], (L, H, I));   bi = vec(keys[9], (L, I))
    wo2 = w(keys[10], (L, I, H)); bo2 = vec(keys[11], (L, H))
    g2 = jnp.ones((L, H), jnp.float32); b2 = jnp.zeros((L, H), jnp.float32)
    return [wq, bq, wk, bk, wv, bv, wo, bo, g1, b1, wi, bi, wo2, bo2, g2, b2]


if __name__ == "__main__":
    key = jax.random.PRNGKey(0)
    k_x, k_p = jax.random.split(key)

    hidden_states = jax.random.normal(k_x, (B, S, H), jnp.float32)

    # Additive attention mask: batch 0 fully visible, batch 1 has last 2 tokens padded.
    lens = jnp.array([S, S - 2])
    pos = jnp.arange(S)[None, :]
    attention_mask = jnp.where(pos < lens[:, None], 0.0, -10000.0).astype(jnp.float32)
    attention_mask = attention_mask[:, None, :]   # (B, 1, S)

    params = make_params(k_p)

    out = jax.block_until_ready(bert_encoder(hidden_states, attention_mask, params))
    ref = reference(hidden_states, attention_mask, params)

    assert out.shape == (B, S, H)
    # Tolerance covers the approx (EUP) softmax reciprocal and MXU accumulation-order
    # differences; the reference uses the same bf16 matmul operand precision.
    assert jnp.allclose(out, ref, rtol=1e-2, atol=1e-2), "mismatch vs reference"

    # TODO(synk): dropout layers are identity (inference); head_mask handling omitted (None);
    #             output_attentions / output_hidden_states are treated as False.
    print("KERNEL_OK")
</pallas_src>

<mosaic_0001>
module attributes {stable_mosaic.version = 11 : i64} {
  func.func @bert_encoder_kernel(%arg0: i32, %arg1: i32, %arg2: memref<8x128xf32, #tpu.memory_space<vmem>>, %arg3: memref<1x1x8xf32, #tpu.memory_space<vmem>>, %arg4: memref<1x128x384xbf16, #tpu.memory_space<vmem>>, %arg5: memref<1x1x384xf32, #tpu.memory_space<vmem>>, %arg6: memref<1x128x128xbf16, #tpu.memory_space<vmem>>, %arg7: memref<1x1x128xf32, #tpu.memory_space<vmem>>, %arg8: memref<1x1x128xf32, #tpu.memory_space<vmem>>, %arg9: memref<1x1x128xf32, #tpu.memory_space<vmem>>, %arg10: memref<1x128x512xbf16, #tpu.memory_space<vmem>>, %arg11: memref<1x1x512xf32, #tpu.memory_space<vmem>>, %arg12: memref<1x512x128xbf16, #tpu.memory_space<vmem>>, %arg13: memref<1x1x128xf32, #tpu.memory_space<vmem>>, %arg14: memref<1x1x128xf32, #tpu.memory_space<vmem>>, %arg15: memref<1x1x128xf32, #tpu.memory_space<vmem>>, %arg16: memref<8x128xf32, #tpu.memory_space<vmem>>, %arg17: memref<8x384xf32, #tpu.memory_space<vmem>>, %arg18: memref<8x128xf32, #tpu.memory_space<vmem>>) attributes {dimension_semantics = [#tpu.dimension_semantics<parallel>, #tpu.dimension_semantics<arbitrary>], iteration_bounds = array<i64: 2, 2>, scalar_prefetch = 0 : i64, scratch_operands = 2 : i64, tpu.core_type = #tpu.core_type<tc>, window_params = [{transform_indices = @transform_0, window_bounds = array<i64: 8, 128>}, {transform_indices = @transform_1, window_bounds = array<i64: 1, 1, 8>}, {transform_indices = @transform_2, window_bounds = array<i64: 1, 128, 384>}, {transform_indices = @transform_3, window_bounds = array<i64: 1, 1, 384>}, {transform_indices = @transform_4, window_bounds = array<i64: 1, 128, 128>}, {transform_indices = @transform_5, window_bounds = array<i64: 1, 1, 128>}, {transform_indices = @transform_6, window_bounds = array<i64: 1, 1, 128>}, {transform_indices = @transform_7, window_bounds = array<i64: 1, 1, 128>}, {transform_indices = @transform_8, window_bounds = array<i64: 1, 128, 512>}, {transform_indices = @transform_9, window_bounds = array<i64: 1, 1, 512>}, {transform_indices = @transform_10, window_bounds = array<i64: 1, 512, 128>}, {transform_indices = @transform_11, window_bounds = array<i64: 1, 1, 128>}, {transform_indices = @transform_12, window_bounds = array<i64: 1, 1, 128>}, {transform_indices = @transform_13, window_bounds = array<i64: 1, 1, 128>}, {transform_indices = @transform_14, window_bounds = array<i64: 8, 128>}]} {
    %c0_i32 = arith.constant 0 : i32
    %0 = arith.cmpi eq, %arg1, %c0_i32 : i32
    %1 = arith.extui %0 : i1 to i32
    %c0_i32_0 = arith.constant 0 : i32
    %2 = arith.cmpi ne, %1, %c0_i32_0 : i32
    scf.if %2 {
      %c0_89 = arith.constant 0 : index
      %c0_90 = arith.constant 0 : index
      %163 = vector.load %arg2[%c0_89, %c0_90] : memref<8x128xf32, #tpu.memory_space<vmem>>, vector<8x128xf32>
      %c0_91 = arith.constant 0 : index
      %c0_92 = arith.constant 0 : index
      %164 = vector.load %arg16[%c0_91, %c0_92] : memref<8x128xf32, #tpu.memory_space<vmem>>, vector<8x128xf32>
      tpu.vector_store %arg16[%c0_91, %c0_92], %163 {strides = array<i32>} : memref<8x128xf32, #tpu.memory_space<vmem>>, vector<8x128xf32>,
    } else {
    }
    %c0 = arith.constant 0 : index
    %c0_1 = arith.constant 0 : index
    %3 = vector.load %arg16[%c0, %c0_1] : memref<8x128xf32, #tpu.memory_space<vmem>>, vector<8x128xf32>
    %4 = arith.truncf %3 : vector<8x128xf32> to vector<8x128xbf16>
    %c0_2 = arith.constant 0 : index
    %c0_3 = arith.constant 0 : index
    %c0_4 = arith.constant 0 : index
    %5 = vector.load %arg4[%c0_2, %c0_3, %c0_4] : memref<1x128x384xbf16, #tpu.memory_space<vmem>>, vector<1x128x384xbf16>
    %6 = vector.shape_cast %5 : vector<1x128x384xbf16> to vector<128x384xbf16>
    %cst = arith.constant dense<0.000000e+00> : vector<8x384xf32>
    %7 = tpu.matmul %4, %6, %cst {dimension_numbers = #tpu.dot_dimension_numbers<[1], [0], [0], [1], [0, 0, 1, 1], [], []>} : vector<8x128xbf16>, vector<128x384xbf16>, vector<8x384xf32> -> vector<8x384xf32>
    %c0_5 = arith.constant 0 : index
    %c0_6 = arith.constant 0 : index
    %c0_7 = arith.constant 0 : index
    %8 = vector.load %arg5[%c0_5, %c0_6, %c0_7] : memref<1x1x384xf32, #tpu.memory_space<vmem>>, vector<1x1x384xf32>
    %9 = vector.shape_cast %8 : vector<1x1x384xf32> to vector<1x384xf32>
    %10 = vector.broadcast %9 : vector<1x384xf32> to vector<8x384xf32>
    %11 = arith.addf %7, %10 : vector<8x384xf32>
    %c0_8 = arith.constant 0 : index
    %c0_9 = arith.constant 0 : index
    %12 = vector.load %arg17[%c0_8, %c0_9] : memref<8x384xf32, #tpu.memory_space<vmem>>, vector<8x384xf32>
    tpu.vector_store %arg17[%c0_8, %c0_9], %11 {strides = array<i32>} : memref<8x384xf32, #tpu.memory_space<vmem>>, vector<8x384xf32>,
    %c0_10 = arith.constant 0 : index
    %c0_11 = arith.constant 0 : index
    %c0_12 = arith.constant 0 : index
    %13 = vector.load %arg3[%c0_10, %c0_11, %c0_12] : memref<1x1x8xf32, #tpu.memory_space<vmem>>, vector<1x1x8xf32>
    %c0_13 = arith.constant 0 : index
    %c0_14 = arith.constant 0 : index
    %14 = vector.load %arg17[%c0_13, %c0_14] : memref<8x384xf32, #tpu.memory_space<vmem>>, vector<8x32xf32>
    %c0_15 = arith.constant 0 : index
    %c32 = arith.constant 32 : index
    %15 = vector.load %arg17[%c0_15, %c32] : memref<8x384xf32, #tpu.memory_space<vmem>>, vector<8x32xf32>
    %c0_16 = arith.constant 0 : index
    %c64 = arith.constant 64 : index
    %16 = vector.load %arg17[%c0_16, %c64] : memref<8x384xf32, #tpu.memory_space<vmem>>, vector<8x32xf32>
    %c0_17 = arith.constant 0 : index
    %c96 = arith.constant 96 : index
    %17 = vector.load %arg17[%c0_17, %c96] : memref<8x384xf32, #tpu.memory_space<vmem>>, vector<8x32xf32>
    %18 = vector.shape_cast %14 : vector<8x32xf32> to vector<1x8x32xf32>
    %19 = vector.shape_cast %15 : vector<8x32xf32> to vector<1x8x32xf32>
    %20 = vector.shape_cast %16 : vector<8x32xf32> to vector<1x8x32xf32>
    %21 = vector.shape_cast %17 : vector<8x32xf32> to vector<1x8x32xf32>
    %22 = tpu.concatenate %18, %19, %20, %21 in 0 : vector<1x8x32xf32>, vector<1x8x32xf32>, vector<1x8x32xf32>, vector<1x8x32xf32> -> vector<4x8x32xf32>
    %c0_18 = arith.constant 0 : index
    %c128 = arith.constant 128 : index
    %23 = vector.load %arg17[%c0_18, %c128] : memref<8x384xf32, #tpu.memory_space<vmem>>, vector<8x32xf32>
    %c0_19 = arith.constant 0 : index
    %c160 = arith.constant 160 : index
    %24 = vector.load %arg17[%c0_19, %c160] : memref<8x384xf32, #tpu.memory_space<vmem>>, vector<8x32xf32>
    %c0_20 = arith.constant 0 : index
    %c192 = arith.constant 192 : index
    %25 = vector.load %arg17[%c0_20, %c192] : memref<8x384xf32, #tpu.memory_space<vmem>>, vector<8x32xf32>
    %c0_21 = arith.constant 0 : index
    %c224 = arith.constant 224 : index
    %26 = vector.load %arg17[%c0_21, %c224] : memref<8x384xf32, #tpu.memory_space<vmem>>, vector<8x32xf32>
    %27 = vector.shape_cast %23 : vector<8x32xf32> to vector<1x8x32xf32>
    %28 = vector.shape_cast %24 : vector<8x32xf32> to vector<1x8x32xf32>
    %29 = vector.shape_cast %25 : vector<8x32xf32> to vector<1x8x32xf32>
    %30 = vector.shape_cast %26 : vector<8x32xf32> to vector<1x8x32xf32>
    %31 = tpu.concatenate %27, %28, %29, %30 in 0 : vector<1x8x32xf32>, vector<1x8x32xf32>, vector<1x8x32xf32>, vector<1x8x32xf32> -> vector<4x8x32xf32>
    %c0_22 = arith.constant 0 : index
    %c256 = arith.constant 256 : index
    %32 = vector.load %arg17[%c0_22, %c256] : memref<8x384xf32, #tpu.memory_space<vmem>>, vector<8x32xf32>
    %c0_23 = arith.constant 0 : index
    %c288 = arith.constant 288 : index
    %33 = vector.load %arg17[%c0_23, %c288] : memref<8x384xf32, #tpu.memory_space<vmem>>, vector<8x32xf32>
    %c0_24 = arith.constant 0 : index
    %c320 = arith.constant 320 : index
    %34 = vector.load %arg17[%c0_24, %c320] : memref<8x384xf32, #tpu.memory_space<vmem>>, vector<8x32xf32>
    %c0_25 = arith.constant 0 : index
    %c352 = arith.constant 352 : index
    %35 = vector.load %arg17[%c0_25, %c352] : memref<8x384xf32, #tpu.memory_space<vmem>>, vector<8x32xf32>
    %36 = vector.shape_cast %32 : vector<8x32xf32> to vector<1x8x32xf32>
    %37 = vector.shape_cast %33 : vector<8x32xf32> to vector<1x8x32xf32>
    %38 = vector.shape_cast %34 : vector<8x32xf32> to vector<1x8x32xf32>
    %39 = vector.shape_cast %35 : vector<8x32xf32> to vector<1x8x32xf32>
    %40 = tpu.concatenate %36, %37, %38, %39 in 0 : vector<1x8x32xf32>, vector<1x8x32xf32>, vector<1x8x32xf32>, vector<1x8x32xf32> -> vector<4x8x32xf32>
    %cst_26 = arith.constant 0.176776692 : f32
    %41 = vector.broadcast %cst_26 : f32 to vector<4x8x32xf32>
    %42 = arith.mulf %22, %41 : vector<4x8x32xf32>
    %43 = arith.truncf %42 : vector<4x8x32xf32> to vector<4x8x32xbf16>
    %44 = arith.truncf %31 : vector<4x8x32xf32> to vector<4x8x32xbf16>
    "tpu.trace_start"() <{level = 10 : i32, message = "nqd,nkd->nqk"}> : () -> ()
    %cst_27 = arith.constant dense<0.000000e+00> : vector<4x8x8xf32>
    %45 = tpu.matmul %43, %44, %cst_27 {dimension_numbers = #tpu.dot_dimension_numbers<[2], [2], [1], [1], [0, 0, 0, 1, 1, 1], [0], [0]>} : vector<4x8x32xbf16>, vector<4x8x32xbf16>, vector<4x8x8xf32> -> vector<4x8x8xf32>
    "tpu.trace_stop"() : () -> ()
    %46 = vector.shape_cast %13 : vector<1x1x8xf32> to vector<1x8xf32>
    %47 = vector.shape_cast %46 : vector<1x8xf32> to vector<1x1x8xf32>
    %48 = vector.broadcast %47 : vector<1x1x8xf32> to vector<4x8x8xf32>
    %49 = arith.addf %45, %48 : vector<4x8x8xf32>
    %cst_28 = arith.constant dense<0xFF800000> : vector<4x8xf32>
    %50 = vector.multi_reduction <maximumf>, %49, %cst_28 [2] : vector<4x8x8xf32> to vector<4x8xf32>
    %51 = vector.shape_cast %50 : vector<4x8xf32> to vector<4x8x1xf32>
    %52 = vector.broadcast %51 : vector<4x8x1xf32> to vector<4x8x8xf32>
    %53 = arith.subf %49, %52 : vector<4x8x8xf32>
    %54 = math.exp %53 : vector<4x8x8xf32>
    %cst_29 = arith.constant dense<0.000000e+00> : vector<4x8xf32>
    %55 = vector.multi_reduction <add>, %54, %cst_29 [2] : vector<4x8x8xf32> to vector<4x8xf32>
    %56 = vector.shape_cast %55 : vector<4x8xf32> to vector<4x8x1xf32>
    %57 = tpu.reciprocal %56 {approx = true} : vector<4x8x1xf32> -> vector<4x8x1xf32>
    %58 = vector.broadcast %57 : vector<4x8x1xf32> to vector<4x8x8xf32>
    %59 = arith.mulf %54, %58 : vector<4x8x8xf32>
    %60 = arith.truncf %59 : vector<4x8x8xf32> to vector<4x8x8xbf16>
    %61 = arith.truncf %40 : vector<4x8x32xf32> to vector<4x8x32xbf16>
    "tpu.trace_start"() <{level = 10 : i32, message = "nqk,nkd->nqd"}> : () -> ()
    %cst_30 = arith.constant dense<0.000000e+00> : vector<4x8x32xf32>
    %62 = tpu.matmul %60, %61, %cst_30 {dimension_numbers = #tpu.dot_dimension_numbers<[2], [1], [1], [2], [0, 0, 0, 1, 1, 2], [0], [0]>} : vector<4x8x8xbf16>, vector<4x8x32xbf16>, vector<4x8x32xf32> -> vector<4x8x32xf32>
    "tpu.trace_stop"() : () -> ()
    %63 = vector.extract_strided_slice %62 {offsets = [0, 0, 0], sizes = [1, 8, 32], strides = [1, 1, 1]} : vector<4x8x32xf32> to vector<1x8x32xf32>
    %64 = vector.shape_cast %63 : vector<1x8x32xf32> to vector<8x32xf32>
    %c0_31 = arith.constant 0 : index
    %c0_32 = arith.constant 0 : index
    %65 = vector.load %arg18[%c0_31, %c0_32] : memref<8x128xf32, #tpu.memory_space<vmem>>, vector<8x32xf32>
    tpu.vector_store %arg18[%c0_31, %c0_32], %64 {strides = array<i32>} : memref<8x128xf32, #tpu.memory_space<vmem>>, vector<8x32xf32>,
    %66 = vector.extract_strided_slice %62 {offsets = [1, 0, 0], sizes = [1, 8, 32], strides = [1, 1, 1]} : vector<4x8x32xf32> to vector<1x8x32xf32>
    %67 = vector.shape_cast %66 : vector<1x8x32xf32> to vector<8x32xf32>
    %c0_33 = arith.constant 0 : index
    %c32_34 = arith.constant 32 : index
    %68 = vector.load %arg18[%c0_33, %c32_34] : memref<8x128xf32, #tpu.memory_space<vmem>>, vector<8x32xf32>
    tpu.vector_store %arg18[%c0_33, %c32_34], %67 {strides = array<i32>} : memref<8x128xf32, #tpu.memory_space<vmem>>, vector<8x32xf32>,
    %69 = vector.extract_strided_slice %62 {offsets = [2, 0, 0], sizes = [1, 8, 32], strides = [1, 1, 1]} : vector<4x8x32xf32> to vector<1x8x32xf32>
    %70 = vector.shape_cast %69 : vector<1x8x32xf32> to vector<8x32xf32>
    %c0_35 = arith.constant 0 : index
    %c64_36 = arith.constant 64 : index
    %71 = vector.load %arg18[%c0_35, %c64_36] : memref<8x128xf32, #tpu.memory_space<vmem>>, vector<8x32xf32>
    tpu.vector_store %arg18[%c0_35, %c64_36], %70 {strides = array<i32>} : memref<8x128xf32, #tpu.memory_space<vmem>>, vector<8x32xf32>,
    %72 = vector.extract_strided_slice %62 {offsets = [3, 0, 0], sizes = [1, 8, 32], strides = [1, 1, 1]} : vector<4x8x32xf32> to vector<1x8x32xf32>
    %73 = vector.shape_cast %72 : vector<1x8x32xf32> to vector<8x32xf32>
    %c0_37 = arith.constant 0 : index
    %c96_38 = arith.constant 96 : index
    %74 = vector.load %arg18[%c0_37, %c96_38] : memref<8x128xf32, #tpu.memory_space<vmem>>, vector<8x32xf32>
    tpu.vector_store %arg18[%c0_37, %c96_38], %73 {strides = array<i32>} : memref<8x128xf32, #tpu.memory_space<vmem>>, vector<8x32xf32>,
    %c0_39 = arith.constant 0 : index
    %c0_40 = arith.constant 0 : index
    %75 = vector.load %arg18[%c0_39, %c0_40] : memref<8x128xf32, #tpu.memory_space<vmem>>, vector<8x128xf32>
    %76 = arith.truncf %75 : vector<8x128xf32> to vector<8x128xbf16>
    %c0_41 = arith.constant 0 : index
    %c0_42 = arith.constant 0 : index
    %c0_43 = arith.constant 0 : index
    %77 = vector.load %arg6[%c0_41, %c0_42, %c0_43] : memref<1x128x128xbf16, #tpu.memory_space<vmem>>, vector<1x128x128xbf16>
    %78 = vector.shape_cast %77 : vector<1x128x128xbf16> to vector<128x128xbf16>
    %cst_44 = arith.constant dense<0.000000e+00> : vector<8x128xf32>
    %79 = tpu.matmul %76, %78, %cst_44 {dimension_numbers = #tpu.dot_dimension_numbers<[1], [0], [0], [1], [0, 0, 1, 1], [], []>} : vector<8x128xbf16>, vector<128x128xbf16>, vector<8x128xf32> -> vector<8x128xf32>
    %c0_45 = arith.constant 0 : index
    %c0_46 = arith.constant 0 : index
    %c0_47 = arith.constant 0 : index
    %80 = vector.load %arg7[%c0_45, %c0_46, %c0_47] : memref<1x1x128xf32, #tpu.memory_space<vmem>>, vector<1x1x128xf32>
    %81 = vector.shape_cast %80 : vector<1x1x128xf32> to vector<1x128xf32>
    %82 = vector.broadcast %81 : vector<1x128xf32> to vector<8x128xf32>
    %83 = arith.addf %79, %82 : vector<8x128xf32>
    %84 = arith.addf %83, %3 : vector<8x128xf32>
    %c0_48 = arith.constant 0 : index
    %c0_49 = arith.constant 0 : index
    %c0_50 = arith.constant 0 : index
    %85 = vector.load %arg8[%c0_48, %c0_49, %c0_50] : memref<1x1x128xf32, #tpu.memory_space<vmem>>, vector<1x1x128xf32>
    %86 = vector.shape_cast %85 : vector<1x1x128xf32> to vector<1x128xf32>
    %c0_51 = arith.constant 0 : index
    %c0_52 = arith.constant 0 : index
    %c0_53 = arith.constant 0 : index
    %87 = vector.load %arg9[%c0_51, %c0_52, %c0_53] : memref<1x1x128xf32, #tpu.memory_space<vmem>>, vector<1x1x128xf32>
    %88 = vector.shape_cast %87 : vector<1x1x128xf32> to vector<1x128xf32>
    %cst_54 = arith.constant dense<0.000000e+00> : vector<8xf32>
    %89 = vector.multi_reduction <add>, %84, %cst_54 [1] : vector<8x128xf32> to vector<8xf32>
    %90 = vector.shape_cast %89 : vector<8xf32> to vector<8x1xf32>
    %cst_55 = arith.constant 1.280000e+02 : f32
    %91 = vector.broadcast %cst_55 : f32 to vector<8x1xf32>
    %92 = arith.divf %90, %91 : vector<8x1xf32>
    %93 = vector.broadcast %92 : vector<8x1xf32> to vector<8x128xf32>
    %94 = arith.subf %84, %93 : vector<8x128xf32>
    %95 = arith.mulf %94, %94 : vector<8x128xf32>
    %cst_56 = arith.constant dense<0.000000e+00> : vector<8xf32>
    %96 = vector.multi_reduction <add>, %95, %cst_56 [1] : vector<8x128xf32> to vector<8xf32>
    %97 = vector.shape_cast %96 : vector<8xf32> to vector<8x1xf32>
    %cst_57 = arith.constant 1.280000e+02 : f32
    %98 = vector.broadcast %cst_57 : f32 to vector<8x1xf32>
    %99 = arith.divf %97, %98 : vector<8x1xf32>
    %100 = vector.broadcast %92 : vector<8x1xf32> to vector<8x128xf32>
    %101 = arith.subf %84, %100 : vector<8x128xf32>
    %cst_58 = arith.constant 9.99999996E-13 : f32
    %102 = vector.broadcast %cst_58 : f32 to vector<8x1xf32>
    %103 = arith.addf %99, %102 : vector<8x1xf32>
    %104 = math.rsqrt %103 : vector<8x1xf32>
    %105 = vector.broadcast %104 : vector<8x1xf32> to vector<8x128xf32>
    %106 = arith.mulf %101, %105 : vector<8x128xf32>
    %107 = vector.broadcast %86 : vector<1x128xf32> to vector<8x128xf32>
    %108 = arith.mulf %106, %107 : vector<8x128xf32>
    %109 = vector.broadcast %88 : vector<1x128xf32> to vector<8x128xf32>
    %110 = arith.addf %108, %109 : vector<8x128xf32>
    %111 = arith.truncf %110 : vector<8x128xf32> to vector<8x128xbf16>
    %c0_59 = arith.constant 0 : index
    %c0_60 = arith.constant 0 : index
    %c0_61 = arith.constant 0 : index
    %112 = vector.load %arg10[%c0_59, %c0_60, %c0_61] : memref<1x128x512xbf16, #tpu.memory_space<vmem>>, vector<1x128x512xbf16>
    %113 = vector.shape_cast %112 : vector<1x128x512xbf16> to vector<128x512xbf16>
    %cst_62 = arith.constant dense<0.000000e+00> : vector<8x512xf32>
    %114 = tpu.matmul %111, %113, %cst_62 {dimension_numbers = #tpu.dot_dimension_numbers<[1], [0], [0], [1], [0, 0, 1, 1], [], []>} : vector<8x128xbf16>, vector<128x512xbf16>, vector<8x512xf32> -> vector<8x512xf32>
    %c0_63 = arith.constant 0 : index
    %c0_64 = arith.constant 0 : index
    %c0_65 = arith.constant 0 : index
    %115 = vector.load %arg11[%c0_63, %c0_64, %c0_65] : memref<1x1x512xf32, #tpu.memory_space<vmem>>, vector<1x1x512xf32>
    %116 = vector.shape_cast %115 : vector<1x1x512xf32> to vector<1x512xf32>
    %117 = vector.broadcast %116 : vector<1x512xf32> to vector<8x512xf32>
    %118 = arith.addf %114, %117 : vector<8x512xf32>
    %cst_66 = arith.constant 5.000000e-01 : f32
    %119 = vector.broadcast %cst_66 : f32 to vector<8x512xf32>
    %120 = arith.mulf %118, %119 : vector<8x512xf32>
    %cst_67 = arith.constant 0.707106769 : f32
    %121 = vector.broadcast %cst_67 : f32 to vector<8x512xf32>
    %122 = arith.mulf %118, %121 : vector<8x512xf32>
    %123 = math.erf %122 : vector<8x512xf32>
    %cst_68 = arith.constant 1.000000e+00 : f32
    %124 = vector.broadcast %cst_68 : f32 to vector<8x512xf32>
    %125 = arith.addf %124, %123 : vector<8x512xf32>
    %126 = arith.mulf %120, %125 : vector<8x512xf32>
    %127 = arith.truncf %126 : vector<8x512xf32> to vector<8x512xbf16>
    %c0_69 = arith.constant 0 : index
    %c0_70 = arith.constant 0 : index
    %c0_71 = arith.constant 0 : index
    %128 = vector.load %arg12[%c0_69, %c0_70, %c0_71] : memref<1x512x128xbf16, #tpu.memory_space<vmem>>, vector<1x512x128xbf16>
    %129 = vector.shape_cast %128 : vector<1x512x128xbf16> to vector<512x128xbf16>
    %cst_72 = arith.constant dense<0.000000e+00> : vector<8x128xf32>
    %130 = tpu.matmul %127, %129, %cst_72 {dimension_numbers = #tpu.dot_dimension_numbers<[1], [0], [0], [1], [0, 0, 1, 1], [], []>} : vector<8x512xbf16>, vector<512x128xbf16>, vector<8x128xf32> -> vector<8x128xf32>
    %c0_73 = arith.constant 0 : index
    %c0_74 = arith.constant 0 : index
    %c0_75 = arith.constant 0 : index
    %131 = vector.load %arg13[%c0_73, %c0_74, %c0_75] : memref<1x1x128xf32, #tpu.memory_space<vmem>>, vector<1x1x128xf32>
    %132 = vector.shape_cast %131 : vector<1x1x128xf32> to vector<1x128xf32>
    %133 = vector.broadcast %132 : vector<1x128xf32> to vector<8x128xf32>
    %134 = arith.addf %130, %133 : vector<8x128xf32>
    %135 = arith.addf %134, %110 : vector<8x128xf32>
    %c0_76 = arith.constant 0 : index
    %c0_77 = arith.constant 0 : index
    %c0_78 = arith.constant 0 : index
    %136 = vector.load %arg14[%c0_76, %c0_77, %c0_78] : memref<1x1x128xf32, #tpu.memory_space<vmem>>, vector<1x1x128xf32>
    %137 = vector.shape_cast %136 : vector<1x1x128xf32> to vector<1x128xf32>
    %c0_79 = arith.constant 0 : index
    %c0_80 = arith.constant 0 : index
    %c0_81 = arith.constant 0 : index
    %138 = vector.load %arg15[%c0_79, %c0_80, %c0_81] : memref<1x1x128xf32, #tpu.memory_space<vmem>>, vector<1x1x128xf32>
    %139 = vector.shape_cast %138 : vector<1x1x128xf32> to vector<1x128xf32>
    %cst_82 = arith.constant dense<0.000000e+00> : vector<8xf32>
    %140 = vector.multi_reduction <add>, %135, %cst_82 [1] : vector<8x128xf32> to vector<8xf32>
    %141 = vector.shape_cast %140 : vector<8xf32> to vector<8x1xf32>
    %cst_83 = arith.constant 1.280000e+02 : f32
    %142 = vector.broadcast %cst_83 : f32 to vector<8x1xf32>
    %143 = arith.divf %141, %142 : vector<8x1xf32>
    %144 = vector.broadcast %143 : vector<8x1xf32> to vector<8x128xf32>
    %145 = arith.subf %135, %144 : vector<8x128xf32>
    %146 = arith.mulf %145, %145 : vector<8x128xf32>
    %cst_84 = arith.constant dense<0.000000e+00> : vector<8xf32>
    %147 = vector.multi_reduction <add>, %146, %cst_84 [1] : vector<8x128xf32> to vector<8xf32>
    %148 = vector.shape_cast %147 : vector<8xf32> to vector<8x1xf32>
    %cst_85 = arith.constant 1.280000e+02 : f32
    %149 = vector.broadcast %cst_85 : f32 to vector<8x1xf32>
    %150 = arith.divf %148, %149 : vector<8x1xf32>
    %151 = vector.broadcast %143 : vector<8x1xf32> to vector<8x128xf32>
    %152 = arith.subf %135, %151 : vector<8x128xf32>
    %cst_86 = arith.constant 9.99999996E-13 : f32
    %153 = vector.broadcast %cst_86 : f32 to vector<8x1xf32>
    %154 = arith.addf %150, %153 : vector<8x1xf32>
    %155 = math.rsqrt %154 : vector<8x1xf32>
    %156 = vector.broadcast %155 : vector<8x1xf32> to vector<8x128xf32>
    %157 = arith.mulf %152, %156 : vector<8x128xf32>
    %158 = vector.broadcast %137 : vector<1x128xf32> to vector<8x128xf32>
    %159 = arith.mulf %157, %158 : vector<8x128xf32>
    %160 = vector.broadcast %139 : vector<1x128xf32> to vector<8x128xf32>
    %161 = arith.addf %159, %160 : vector<8x128xf32>
    %c0_87 = arith.constant 0 : index
    %c0_88 = arith.constant 0 : index
    %162 = vector.load %arg16[%c0_87, %c0_88] : memref<8x128xf32, #tpu.memory_space<vmem>>, vector<8x128xf32>
    tpu.vector_store %arg16[%c0_87, %c0_88], %161 {strides = array<i32>} : memref<8x128xf32, #tpu.memory_space<vmem>>, vector<8x128xf32>,
    return
  }
  func.func @transform_0(%arg0: i32, %arg1: i32) -> (i32, i32) {
    %c0_i32 = arith.constant 0 : i32
    %c0_i32_0 = arith.constant 0 : i32
    return %arg0, %c0_i32 : i32, i32
  }
  func.func @transform_1(%arg0: i32, %arg1: i32) -> (i32, i32, i32) {
    %c0_i32 = arith.constant 0 : i32
    %c0_i32_0 = arith.constant 0 : i32
    %c0_i32_1 = arith.constant 0 : i32
    return %arg0, %c0_i32, %c0_i32_0 : i32, i32, i32
  }
  func.func @transform_2(%arg0: i32, %arg1: i32) -> (i32, i32, i32) {
    %c0_i32 = arith.constant 0 : i32
    %c0_i32_0 = arith.constant 0 : i32
    %c0_i32_1 = arith.constant 0 : i32
    return %arg1, %c0_i32, %c0_i32_0 : i32, i32, i32
  }
  func.func @transform_3(%arg0: i32, %arg1: i32) -> (i32, i32, i32) {
    %c0_i32 = arith.constant 0 : i32
    %c0_i32_0 = arith.constant 0 : i32
    %c0_i32_1 = arith.constant 0 : i32
    return %arg1, %c0_i32, %c0_i32_0 : i32, i32, i32
  }
  func.func @transform_4(%arg0: i32, %arg1: i32) -> (i32, i32, i32) {
    %c0_i32 = arith.constant 0 : i32
    %c0_i32_0 = arith.constant 0 : i32
    %c0_i32_1 = arith.constant 0 : i32
    return %arg1, %c0_i32, %c0_i32_0 : i32, i32, i32
  }
  func.func @transform_5(%arg0: i32, %arg1: i32) -> (i32, i32, i32) {
    %c0_i32 = arith.constant 0 : i32
    %c0_i32_0 = arith.constant 0 : i32
    %c0_i32_1 = arith.constant 0 : i32
    return %arg1, %c0_i32, %c0_i32_0 : i32, i32, i32
  }
  func.func @transform_6(%arg0: i32, %arg1: i32) -> (i32, i32, i32) {
    %c0_i32 = arith.constant 0 : i32
    %c0_i32_0 = arith.constant 0 : i32
    %c0_i32_1 = arith.constant 0 : i32
    return %arg1, %c0_i32, %c0_i32_0 : i32, i32, i32
  }
  func.func @transform_7(%arg0: i32, %arg1: i32) -> (i32, i32, i32) {
    %c0_i32 = arith.constant 0 : i32
    %c0_i32_0 = arith.constant 0 : i32
    %c0_i32_1 = arith.constant 0 : i32
    return %arg1, %c0_i32, %c0_i32_0 : i32, i32, i32
  }
  func.func @transform_8(%arg0: i32, %arg1: i32) -> (i32, i32, i32) {
    %c0_i32 = arith.constant 0 : i32
    %c0_i32_0 = arith.constant 0 : i32
    %c0_i32_1 = arith.constant 0 : i32
    return %arg1, %c0_i32, %c0_i32_0 : i32, i32, i32
  }
  func.func @transform_9(%arg0: i32, %arg1: i32) -> (i32, i32, i32) {
    %c0_i32 = arith.constant 0 : i32
    %c0_i32_0 = arith.constant 0 : i32
    %c0_i32_1 = arith.constant 0 : i32
    return %arg1, %c0_i32, %c0_i32_0 : i32, i32, i32
  }
  func.func @transform_10(%arg0: i32, %arg1: i32) -> (i32, i32, i32) {
    %c0_i32 = arith.constant 0 : i32
    %c0_i32_0 = arith.constant 0 : i32
    %c0_i32_1 = arith.constant 0 : i32
    return %arg1, %c0_i32, %c0_i32_0 : i32, i32, i32
  }
  func.func @transform_11(%arg0: i32, %arg1: i32) -> (i32, i32, i32) {
    %c0_i32 = arith.constant 0 : i32
    %c0_i32_0 = arith.constant 0 : i32
    %c0_i32_1 = arith.constant 0 : i32
    return %arg1, %c0_i32, %c0_i32_0 : i32, i32, i32
  }
  func.func @transform_12(%arg0: i32, %arg1: i32) -> (i32, i32, i32) {
    %c0_i32 = arith.constant 0 : i32
    %c0_i32_0 = arith.constant 0 : i32
    %c0_i32_1 = arith.constant 0 : i32
    return %arg1, %c0_i32, %c0_i32_0 : i32, i32, i32
  }
  func.func @transform_13(%arg0: i32, %arg1: i32) -> (i32, i32, i32) {
    %c0_i32 = arith.constant 0 : i32
    %c0_i32_0 = arith.constant 0 : i32
    %c0_i32_1 = arith.constant 0 : i32
    return %arg1, %c0_i32, %c0_i32_0 : i32, i32, i32
  }
  func.func @transform_14(%arg0: i32, %arg1: i32) -> (i32, i32) {
    %c0_i32 = arith.constant 0 : i32
    %c0_i32_0 = arith.constant 0 : i32
    return %arg0, %c0_i32 : i32, i32
  }
}

</mosaic_0001>

<bundles_post_ra>
// kernel: tpu_custom_call.1
= control target key start
LH: loop header
LB: loop body
LE: loop exit
PB: predicated region body
PF: predicated region fallthrough
CT: control target
= control target key end

     0   :  { %s4391_s0 = inlined_call_operand.hbm [shape: f32[16,128], index: 0, kind: input, shape index: {}]   ;;  %s4392_s1 = inlined_call_operand.hbm [shape: f32[2,1,8], index: 1, kind: input, shape index: {}]   ;;  %s4393_s2 = inlined_call_operand.hbm [shape: bf16[2,128,384], index: 2, kind: input, shape index: {}]   ;;  %s4394_s3 = inlined_call_operand.hbm [shape: f32[2,1,384], index: 3, kind: input, shape index: {}]   ;;  %s4395_s4 = inlined_call_operand.hbm [shape: bf16[2,128,128], index: 4, kind: input, shape index: {}]   ;;  %s4396_s5 = inlined_call_operand.vmem [shape: f32[2,1,128], index: 5, kind: input, shape index: {}]   ;;  %s4397_s6 = inlined_call_operand.vmem [shape: f32[2,1,128], index: 6, kind: input, shape index: {}]   ;;  %s4398_s7 = inlined_call_operand.vmem [shape: f32[2,1,128], index: 7, kind: input, shape index: {}]   ;;  %s4399_s8 = inlined_call_operand.hbm [shape: bf16[2,128,512], index: 8, kind: input, shape index: {}]   ;;  %s4400_s9 = inlined_call_operand.vmem [shape: f32[2,1,512], index: 9, kind: input, shape index: {}]   ;;  %s4401_s10 = inlined_call_operand.hbm [shape: bf16[2,512,128], index: 10, kind: input, shape index: {}]   ;;  %s4402_s11 = inlined_call_operand.vmem [shape: f32[2,1,128], index: 11, kind: input, shape index: {}]   ;;  %s4403_s12 = inlined_call_operand.vmem [shape: f32[2,1,128], index: 12, kind: input, shape index: {}]   ;;  %s4404_s13 = inlined_call_operand.vmem [shape: f32[2,1,128], index: 13, kind: input, shape index: {}]   ;;  %s4405_s14 = inlined_call_operand.hbm [shape: f32[16,128], index: 14, kind: output, shape index: {}]  }
   0x1   :  { %4432 = sst [smem:[#allocation42_spill]] %s4391_s0 }
   0x2   :  { %4433 = sst [smem:[#allocation43_spill]] %s4392_s1 }
   0x3   :  { %4434 = sst [smem:[#allocation44_spill]] %s4393_s2 }
   0x4   :  { %4435 = sst [smem:[#allocation45_spill]] %s4394_s3 }
   0x5   :  { %4436 = sst [smem:[#allocation46_spill]] %s4395_s4 }
   0x6   :  { %4437 = sst [smem:[#allocation47_spill]] %s4396_s5 }
   0x7   :  { %4438 = sst [smem:[#allocation48_spill]] %s4397_s6 }
   0x8   :  { %4439 = sst [smem:[#allocation49_spill]] %s4398_s7 }
   0x9   :  { %4440 = sst [smem:[#allocation50_spill]] %s4399_s8 }
   0xa   :  { %4441 = sst [smem:[#allocation51_spill]] %s4400_s9 }
   0xb   :  { %4442 = sst [smem:[#allocation52_spill]] %s4401_s10 }
   0xc   :  { %4443 = sst [smem:[#allocation53_spill]] %s4402_s11 }
   0xd   :  { %4444 = sst [smem:[#allocation54_spill]] %s4403_s12 }
   0xe   :  { %4445 = sst [smem:[#allocation55_spill]] %s4404_s13 }
   0xf   :  { %4446 = sst [smem:[#allocation56_spill]] %s4405_s14 }
  0x10   :  { %19 = vsyncpa [#allocation5], 0 }
  0x11   :  { %21 = vsyncpa [#allocation5 + $0x1], 0 }
  0x12   :  { %22 = vsyncpa [#allocation8], 0 }
  0x13   :  { %24 = vsyncpa [#allocation8 + $0x1], 0 }
  0x14   :  { %25 = vsyncpa [#allocation11], 0 }
  0x15   :  { %27 = vsyncpa [#allocation11 + $0x1], 0 }
  0x16   :  { %28 = vsyncpa [#allocation14], 0 }
  0x17   :  { %30 = vsyncpa [#allocation14 + $0x1], 0 }
  0x18   :  { %31 = vsyncpa [#allocation6], 0 }
  0x19   :  { %33 = vsyncpa [#allocation6 + $0x1], 0  ;;  %s3742_s29 = smov 0   ;;  %s3744_s30 = smov 0  }
  0x1a   :  { %s3746_s15 = smov 0   ;;  %s3748_s16 = smov 0  }
  0x1b   :  { %s3750_s17 = smov 0   ;;  %s3752_s18 = smov 0  }
  0x1c   :  { %s3754_s19 = smov 0   ;;  %s3756_s20 = smov 0  }
  0x1d   :  { %s3758_s21 = smov 0   ;;  %s3760_s22 = smov 0  }
  0x1e   :  { %s3762_s23 = smov 0  }
  0x1f LB: > { %4447 = sst [smem:[#allocation23_spill]] %s3609_s30  ;;  %s3796_s24 = sadd.s32 4294967295, %s3645_s23   ;;  %s3645_s23 = sphi %s3762_s23, %s39_s23   ;;  %s3641_s22 = sphi %s3760_s22, %s4534_s22   ;;  %s3637_s21 = sphi %s3758_s21, %s4536_s21   ;;  %s3633_s20 = sphi %s3756_s20, %s4532_s20   ;;  %s3629_s19 = sphi %s3754_s19, %s4535_s19   ;;  %s3625_s18 = sphi %s3752_s18, %s4531_s18   ;;  %s3621_s17 = sphi %s3750_s17, %s4530_s17   ;;  %s3617_s16 = sphi %s3748_s16, %s4529_s16   ;;  %s3613_s15 = sphi %s3746_s15, %s4528_s15   ;;  %s3609_s30 = sphi %s3744_s30, %s4527_s30   ;;  %s3605_s29 = sphi %s3742_s29, %s4526_s29  }
  0x20   : > { %4448 = sst [smem:[#allocation24_spill]] %s3613_s15  ;;  %s2706_s25 = sadd.s32 4294967294, %s3645_s23  }
  0x21   : > { %4449 = sst [smem:[#allocation25_spill]] %s3617_s16  ;;  %p65_p0 = scmp.ne.s32.totalorder %s3625_s18, %s3621_s17 }
  0x22   : > { %4450 = sst [smem:[#allocation26_spill]] %s3621_s17  ;;  %p66_p1 = scmp.eq.s32.totalorder %s3645_s23, 0 }
  0x23   : > { %4451 = sst [smem:[#allocation27_spill]] %s3625_s18  ;;  %p71_p2 = scmp.ne.s32.totalorder %s3621_s17, %s3617_s16 }
  0x24   : > { %4452 = sst [smem:[#allocation28_spill]] %s3629_s19  ;;  %p72_p3 = scmp.eq.s32.totalorder %s3796_s24, 0 }
  0x25   : > { %4453 = sst [smem:[#allocation29_spill]] %s3633_s20  ;;  %p3810_p4 = por %p66_p1, %p65_p0 }
  0x26   : > { %4454 = sst [smem:[#allocation30_spill]] %s3641_s22  ;;  %p3815_p5 = por %p72_p3, %p71_p2 }
  0x27   : > { %4455 = sst [smem:[#allocation31_spill]] %s3645_s23  ;;  %p117_p6 = scmp.ne.s32.totalorder %s3613_s15, %s3609_s30 }
  0x28   : > { %4456 = sst [smem:[#allocation32_spill]] %s3796_s24  ;;  %p123_p7 = scmp.ne.s32.totalorder %s3609_s30, %s3605_s29 }
  0x29   : > { %s4458_s20 = scalar_select %p3815_p5, 1, 0 }
  0x2a   : > { %p433_p8 = scmp.eq.s32.totalorder %s3796_s24, 3  ;;  %p3823_p9 = por %p117_p6, %p66_p1 }
  0x2b   : > { %4459 = sst [smem:[#allocation33_spill]] %s4458_s20  ;;  %p439_p10 = scmp.eq.s32.totalorder %s2706_s25, 3 }
  0x2c   : > { %p3827_p11 = por %p123_p7, %p72_p3  ;;  %p3834_p12 = por %p433_p8, %p65_p0 }
  0x2d   : > { %p3838_p13 = por %p439_p10, %p71_p2  ;;  %p3063_p5 = scmp.lt.s32.totalorder %s3645_s23, 4 }
  0x2e   : > { %s4461_s26 = scalar_select %p3827_p11, 1, 0 }
  0x2f   : > { %s4463_s14 = scalar_select %p3834_p12, 1, 0 }
  0x30   : > { %4462 = sst [smem:[#allocation34_spill]] %s4461_s26  ;;  %s3844_s29 = sand.u32 1, %s3625_s18  }
  0x31   : > { %4464 = sst [smem:[#allocation35_spill]] %s4463_s14  ;;  %s3847_s13 = sand.u32 1, %s3645_s23  }
  0x32   : > { %s4465_s16 = scalar_select %p3838_p13, 1, 0 }
  0x33   : > { %p3851_p1 = pnand %p3063_p5, %p3810_p4  ;;  %s2711_s12 = sshll.u32 %s3641_s22, 4 }
  0x34   : > { %4466 = sst [smem:[#allocation36_spill]] %s4465_s16  ;;  %s480_s14 = scalar_lea.vmem [#allocation7], %s3844_s29 }
  0x35   : > { %s487_s11 = sshll.u32 %s480_s14, 4  ;;  %s4468_s1 = sld [smem:[#allocation43_spill]]  ;;  %s488_s11 = int_to_ptr.vmem [resolvable:$true] %s487_s11 }
  0x36   : > { %p3862_p0 = pnand %p3063_p5, %p3823_p9  ;;  %s4413_s28 = scalar_lea.sflag [#allocation8], %s3847_s13 }
  0x37   : > { %p4422_p2 = pneg %p3851_p1  ;;  %s3326_s5 = scalar_lea.vmem %s488_s11, 16 }
  0x38   : > { %p3327_p3 = scmp.ne.s32.totalorder %s488_s11, %s3326_s5  ;;  %s3647_s14 = smov [#allocation7]  }
  0x39   : > { %s3331_s19 = sshll.u32 %s3647_s14, 4  ;;  %s3332_s19 = int_to_ptr.vmem [resolvable:$false] %s3331_s19 }
  0x3a   : > { %p3329_p4 = pnand %p3327_p3, %p4422_p2  ;;  %s3333_s7 = scalar_lea.vmem %s3332_s19, 32 }
  0x3b   : > { %s485_s16 = scalar_lea.hbm %s4468_s1, %s2711_s12  ;;  %p3334_p7 = scmp.lt.s32.totalorder %s488_s11, %s3332_s19 }
  0x3c   : > { %p3330_p6 = pneg %p3329_p4  ;;  %p3335_p8 = scmp.lt.s32.totalorder %s3333_s7, %s3326_s5 }
  0x3e   : > { %p3336_p10 = por %p3335_p8, %p3334_p7 }
  0x40   : > { %p3337_p5 = pnand %p3336_p10, %p3330_p6 }
  0x42   : > { %3340 = shalt.err (!%p3337_p5)
}
  0x43   : > { %3043 = dma.hbm_to_vmem [thread:$0]  (!%p3851_p1), %s485_s16, 16, %s488_s11, %s4413_s28  }
  0x44   : > { %p2723_p9 = scmp.ge.s32.totalorder %s3645_s23, 1  ;;  %p638_p3 = scmp.lt.s32.totalorder %s3645_s23, 5 }
  0x45   : > { %s3879_s9 = sand.u32 1, %s3613_s15   ;;  %s48_s12 = sadd.s32 1, %s3637_s21 }
  0x46   : > { %p3881_p4 = pnand %p2723_p9, %p638_p3  ;;  %p49_p6 = scmp.ge.s32.totalorder %s48_s12, 2 }
  0x47   : > { %s3017_s27 = smul.u32 3, %s3879_s9  ;;  %s4473_s16 = sadd.s32 1, %s3641_s22 }
  0x48   : > { %s4470_s5 = scalar_select %p3881_p4, 1, 0 }
  0x49   : > { %s4538_s12 = smov (%p49_p6, %s48_s12), 0  ;;  %s4540_s16 = smov (!%p49_p6, %s4473_s16), %s3641_s22 }
  0x4a   : > { %4471 = sst [smem:[#allocation37_spill]] %s4470_s5  ;;  %s107_s14 = ssub.s32 %s3637_s21, %s4538_s12 }
  0x4b   : > { %4472 = sst [smem:[#allocation38_spill]] %s4538_s12  ;;  %p53_p7 = scmp.ge.s32.totalorder %s4540_s16, 2 }
  0x4c   : > { %p108_p8 = scmp.eq.s32.totalorder %s107_s14, 0  ;;  %s3018_s7 = smul.u32 48, %s3637_s21 }
  0x4d   : > { %s519_s28 = scalar_lea.vmem [#allocation10], %s3017_s27  ;;  %s4542_s16 = smov (%p53_p7, %s4540_s16), 0 }
  0x4e   : > { %s527_s1 = sshll.u32 %s519_s28, 4  ;;  %4474 = sst [smem:[#allocation39_spill]] %s4542_s16  ;;  %s528_s1 = int_to_ptr.vmem [resolvable:$true] %s527_s1 }
  0x4f   : > { %s4475_s23 = sadd.s32 1, %s3613_s15  ;;  %s55_s26 = ssub.s32 %s3641_s22, %s4542_s16 }
  0x50   : > { %s3902_s19 = scalar_select %p108_p8, %s3613_s15, %s4475_s23  }
  0x51   : > { %s4477_s3 = sld [smem:[#allocation45_spill]]  ;;  %p3909_p10 = scmp.eq.s32.totalorder %s55_s26, 0 }
  0x52   : > { %4476 = sst [smem:[#allocation40_spill]] %s3902_s19  ;;  %s4426_s14 = scalar_lea.sflag [#allocation11], %s3847_s13 }
  0x53   : > { %p3916_p5 = pneg %p3862_p0  ;;  %s3354_s27 = scalar_lea.vmem %s528_s1, 48 }
  0x54   : > { %p3355_p9 = scmp.ne.s32.totalorder %s528_s1, %s3354_s27  ;;  %s3648_s23 = smov [#allocation10]  }
  0x55   : > { %s3359_s30 = sshll.u32 %s3648_s23, 4  ;;  %s3360_s30 = int_to_ptr.vmem [resolvable:$false] %s3359_s30 }
  0x56   : > { %p3357_p3 = pnand %p3355_p9, %p3916_p5  ;;  %s3361_s26 = scalar_lea.vmem %s3360_s30, 96 }
  0x57   : > { %s525_s24 = scalar_lea.hbm %s4477_s3, %s3018_s7  ;;  %p3362_p7 = scmp.lt.s32.totalorder %s528_s1, %s3360_s30 }
  0x58   : > { %p3358_p6 = pneg %p3357_p3  ;;  %p3363_p8 = scmp.lt.s32.totalorder %s3361_s26, %s3354_s27 }
  0x5a   : > { %p3364_p2 = por %p3363_p8, %p3362_p7 }
  0x5c   : > { %p3365_p13 = pnand %p3364_p2, %p3358_p6 }
  0x5e   : > { %3368 = shalt.err (!%p3365_p13)
}
  0x5f   : > { %3049 = dma.hbm_to_vmem [thread:$0]  (!%p3862_p0), %s525_s24, 48, %s528_s1, %s4426_s14  }
  0x60   : > { %s4480_s11 = sadd.s32 1, %s3625_s18  ;;  %s2847_s27 = sshll.u32 %s3637_s21, 12 }
  0x61   : > { %s3931_s7 = scalar_select %p3909_p10, %s3625_s18, %s4480_s11  }
  0x62   : > { %s4482_s8 = sld [smem:[#allocation50_spill]]  ;;  %s4483_s3 = sshll.u32 %s3879_s9, 8 }
  0x63   : > { %4481 = sst [smem:[#allocation41_spill]] %s3931_s7  ;;  %s577_s16 = scalar_lea.vmem [#allocation13], %s4483_s3 }
  0x64   : > { %s584_s12 = sshll.u32 %s577_s16, 4  ;;  %s574_s19 = scalar_lea.sflag [#allocation14], %s3847_s13  ;;  %s585_s12 = int_to_ptr.vmem [resolvable:$true] %s584_s12 }
  0x65   : > { %s3382_s15 = scalar_lea.vmem %s585_s12, 4096  ;;  %s3649_s1 = smov [#allocation13]  }
  0x66   : > { %p3383_p13 = scmp.ne.s32.totalorder %s585_s12, %s3382_s15  ;;  %s3387_s24 = sshll.u32 %s3649_s1, 4  ;;  %s3388_s24 = int_to_ptr.vmem [resolvable:$false] %s3387_s24 }
  0x67   : > { %s3389_s20 = scalar_lea.vmem %s3388_s24, 8192  ;;  %p3390_p10 = scmp.lt.s32.totalorder %s585_s12, %s3388_s24 }
  0x68   : > { %s583_s26 = scalar_lea.hbm %s4482_s8, %s2847_s27  ;;  %p3385_p2 = pnand %p3383_p13, %p3916_p5 }
  0x69   : > { %p3391_p3 = scmp.lt.s32.totalorder %s3389_s20, %s3382_s15 }
  0x6a   : > { %p3386_p9 = pneg %p3385_p2 }
  0x6b   : > { %p3392_p6 = por %p3391_p3, %p3390_p10 }
  0x6d   : > { %p3393_p7 = pnand %p3392_p6, %p3386_p9 }
  0x6f   : > { %3396 = shalt.err (!%p3393_p7)
}
  0x70   : > { %s3650_s11 = smov 256   ;;  %s3651_s3 = smov 16  }
  0x71   : > { %3055 = dma.hbm_to_vmem [thread:$0]  (!%p3862_p0), %s583_s26, 4096, %s585_s12, %s574_s19, %s3650_s11, %s3650_s11, %s3651_s3  }
  0x72   : > { %s4484_s10 = sld [smem:[#allocation52_spill]]  ;;  %s4485_s30 = sshll.u32 %s3879_s9, 8 }
  0x73   : > { %s605_s1 = scalar_lea.vmem [#allocation15], %s4485_s30  ;;  %s2709_s20 = sshll.u32 %s3844_s29, 3 }
  0x74   : > { %s612_s24 = sshll.u32 %s605_s1, 4  ;;  %s2710_s14 = sshll.u32 %s3641_s22, 7  ;;  %s3953_s24 = int_to_ptr.vmem [resolvable:$true] %s612_s24 }
  0x75   : > { %s4486_s0 = sld [smem:[#allocation42_spill]]  ;;  %s463_s17 = scalar_lea.vmem [#allocation4], %s2709_s20 }
  0x76   : > { %s470_s5 = sshll.u32 %s463_s17, 4  ;;  %s3016_s12 = smul.u32 3072, %s3637_s21  ;;  %s471_s5 = int_to_ptr.vmem [resolvable:$true] %s470_s5 }
  0x77   : > { %s460_s26 = scalar_lea.sflag [#allocation5], %s3844_s29  ;;  %s3410_s11 = scalar_lea.vmem %s471_s5, 128 }
  0x78   : > { %s3949_s15 = scalar_lea.hbm %s4484_s10, %s2847_s27  ;;  %p3411_p8 = scmp.ne.s32.totalorder %s471_s5, %s3410_s11 }
  0x79   : > { %p4487_p13 = pneg %p3851_p1  ;;  %s3652_s27 = smov [#allocation4]  }
  0x7a   : > { %s3415_s3 = sshll.u32 %s3652_s27, 4  ;;  %s3416_s3 = int_to_ptr.vmem [resolvable:$false] %s3415_s3 }
  0x7b   : > { %s468_s18 = scalar_lea.hbm %s4486_s0, %s2710_s14  ;;  %p3413_p2 = pnand %p3411_p8, %p4487_p13 }
  0x7c   : > { %s3417_s16 = scalar_lea.vmem %s3416_s3, 256  ;;  %p3418_p10 = scmp.lt.s32.totalorder %s471_s5, %s3416_s3 }
  0x7d   : > { %p3414_p9 = pneg %p3413_p2  ;;  %p3419_p3 = scmp.lt.s32.totalorder %s3417_s16, %s3410_s11 }
  0x7f   : > { %p3420_p6 = por %p3419_p3, %p3418_p10 }
  0x81   : > { %p3421_p7 = pnand %p3420_p6, %p3414_p9 }
  0x83   : > { %3424 = shalt.err (!%p3421_p7)
}
  0x84   : > { %3040 = dma.hbm_to_vmem [thread:$0]  (!%p3851_p1), %s468_s18, 128, %s471_s5, %s460_s26  }
  0x85   : > { %s4488_s2 = sld [smem:[#allocation44_spill]]  ;;  %s4489_s14 = smul.u32 192, %s3879_s9 }
  0x86   : > { %s2714_s30 = sshll.u32 %s3879_s9, 6  ;;  %s3653_s20 = smov [#allocation9]  }
  0x87   : > { %s498_s7 = scalar_lea.vmem [#allocation9], %s4489_s14  ;;  %s3443_s25 = sshll.u32 %s3653_s20, 4  ;;  %s3444_s25 = int_to_ptr.vmem [resolvable:$false] %s3443_s25 }
  0x88   : > { %s505_s23 = sshll.u32 %s498_s7, 4  ;;  %s3445_s11 = scalar_lea.vmem %s3444_s25, 6144  ;;  %s506_s23 = int_to_ptr.vmem [resolvable:$true] %s505_s23 }
  0x89   : > { %s3438_s1 = scalar_lea.vmem %s506_s23, 3072  ;;  %p3446_p9 = scmp.lt.s32.totalorder %s506_s23, %s3444_s25 }
  0x8a   : > { %p3439_p8 = scmp.ne.s32.totalorder %s506_s23, %s3438_s1  ;;  %p3447_p1 = scmp.lt.s32.totalorder %s3445_s11, %s3438_s1 }
  0x8b   : > { %s504_s29 = scalar_lea.hbm %s4488_s2, %s3016_s12 }
  0x8c   : > { %p3441_p13 = pnand %p3439_p8, %p3916_p5  ;;  %p3448_p10 = por %p3447_p1, %p3446_p9 }
  0x8e   : > { %p3442_p2 = pneg %p3441_p13 }
  0x90   : > { %p3449_p3 = pnand %p3448_p10, %p3442_p2 }
  0x92   : > { %3452 = shalt.err (!%p3449_p3)
}
  0x93   : > { %s3654_s18 = smov 192   ;;  %s3655_s9 = smov 12  }
  0x94   : > { %s4490_s5 = scalar_lea.sflag [#allocation8], %s3847_s13  ;;  %s2846_s12 = sshll.u32 %s3637_s21, 10 }
  0x95   : > { %3046 = dma.hbm_to_vmem [thread:$0]  (!%p3862_p0), %s504_s29, 3072, %s506_s23, %s4490_s5, %s3654_s18, %s3654_s18, %s3655_s9  }
  0x96   : > { %s4491_s4 = sld [smem:[#allocation46_spill]]  ;;  %s538_s16 = scalar_lea.vmem [#allocation12], %s2714_s30 }
  0x97   : > { %s545_s8 = sshll.u32 %s538_s16, 4  ;;  %s3656_s14 = smov [#allocation12]   ;;  %s546_s8 = int_to_ptr.vmem [resolvable:$true] %s545_s8 }
  0x98   : > { %s3466_s17 = scalar_lea.vmem %s546_s8, 1024  ;;  %s3471_s7 = sshll.u32 %s3656_s14, 4  ;;  %s3472_s7 = int_to_ptr.vmem [resolvable:$false] %s3471_s7 }
  0x99   : > { %p3467_p6 = scmp.ne.s32.totalorder %s546_s8, %s3466_s17  ;;  %s3473_s1 = scalar_lea.vmem %s3472_s7, 2048 }
  0x9a   : > { %p3474_p13 = scmp.lt.s32.totalorder %s546_s8, %s3472_s7  ;;  %p3475_p2 = scmp.lt.s32.totalorder %s3473_s1, %s3466_s17 }
  0x9b   : > { %p3469_p7 = pnand %p3467_p6, %p3916_p5 }
  0x9c   : > { %s544_s3 = scalar_lea.hbm %s4491_s4, %s2846_s12  ;;  %p3476_p9 = por %p3475_p2, %p3474_p13 }
  0x9d   : > { %p3470_p8 = pneg %p3469_p7 }
  0x9f   : > { %p3477_p1 = pnand %p3476_p9, %p3470_p8 }
  0xa1   : > { %3480 = shalt.err (!%p3477_p1)
}
  0xa2   : > { %s3657_s29 = smov 64   ;;  %s3658_s23 = smov 4  }
  0xa3   : > { %s4492_s30 = scalar_lea.sflag [#allocation11], %s3847_s13  ;;  %s3494_s20 = scalar_lea.vmem %s3953_s24, 4096 }
  0xa4   : > { %3052 = dma.hbm_to_vmem [thread:$0]  (!%p3862_p0), %s544_s3, 1024, %s546_s8, %s4492_s30, %s3657_s29, %s3657_s29, %s3658_s23  }
  0xa5   : > { %p3495_p10 = scmp.ne.s32.totalorder %s3953_s24, %s3494_s20  ;;  %s3659_s25 = smov [#allocation15]  }
  0xa6   : > { %s3499_s11 = sshll.u32 %s3659_s25, 4  ;;  %s3500_s11 = int_to_ptr.vmem [resolvable:$false] %s3499_s11 }
  0xa7   : > { %p3497_p3 = pnand %p3495_p10, %p3916_p5  ;;  %s3501_s18 = scalar_lea.vmem %s3500_s11, 8192 }
  0xa8   : > { %p3502_p7 = scmp.lt.s32.totalorder %s3953_s24, %s3500_s11  ;;  %p3503_p8 = scmp.lt.s32.totalorder %s3501_s18, %s3494_s20 }
  0xa9   : > { %p3498_p6 = pneg %p3497_p3 }
  0xaa   : > { %p3504_p13 = por %p3503_p8, %p3502_p7 }
  0xac   : > { %p3505_p2 = pnand %p3504_p13, %p3498_p6 }
  0xae   : > { %3508 = shalt.err (!%p3505_p2)
}
  0xaf   : > { %3058 = dma.hbm_to_vmem [thread:$0]  (!%p3862_p0), %s3949_s15, 4096, %s3953_s24, %s574_s19, %s3657_s29, %s3657_s29, %s3658_s23  }
  0xb0   : > { %642 = sbr.rel (%p3881_p4) target bundleno = 2677 (0xa75), region = 76  ;;  %s4494_s28 = sld [smem:[#allocation26_spill]] (!%p3881_p4) }
  0xb1   : > { %s4495_s5 = sld [smem:[#allocation33_spill]] (!%p3881_p4) }
  0xb6   : > { %s4003_s12 = sand.u32 1, %s4494_s28  }
  0xb7   : > { %s4430_s26 = sshll.u32 %s4003_s12, 3  ;;  %s645_s27 = scalar_lea.sflag [#allocation5], %s4003_s12 }
  0xb8   : > { %s4009_s3 = scalar_lea.vmem [#allocation4], %s4430_s26  ;;  %p4496_p5 = scmp.ne.s32.totalorder %s4495_s5, 0 }
  0xba   : > { %3580 = dma.done.wait (%p4496_p5), %s645_s27, 128  }
  0xbb   : > { %3582 = vsyncadd (%p4496_p5), %s645_s27, 4294967168  ;;  %s4497_s6 = sld [smem:[#allocation32_spill]] }
  0xc1   : > { %s653_s13 = sand.u32 1, %s4497_s6  }
  0xc2   : > { %s654_s19 = scalar_lea.sflag [#allocation8], %s653_s13 }
  0xc3   : > { %3584 = dma.done.wait (%p4496_p5), %s654_s19, 16  }
  0xc4   : > { %3586 = vsyncadd (%p4496_p5), %s654_s19, 4294967280  ;;  %s4498_s24 = sld [smem:[#allocation23_spill]] }
  0xca   : > { %s663_s8 = sand.u32 1, %s4498_s24  }
  0xcb   : > { %s3019_s17 = smul.u32 192, %s663_s8 }
  0xcd   : > { %s4022_s14 = scalar_lea.vmem [#allocation9], %s3019_s17 }
  0xce   : > { %3588 = dma.done.wait (%p3827_p11), %s654_s19, 3072  }
  0xcf   : > { %3590 = vsyncadd (%p3827_p11), %s654_s19, 4294964224  ;;  %s3020_s7 = smul.u32 3, %s663_s8  ;;  %s671_s1 = scalar_lea.sflag [#allocation11], %s653_s13 }
  0xd1   : > { %s4028_s29 = scalar_lea.vmem [#allocation10], %s3020_s7 }
  0xd2   : > { %3592 = dma.done.wait (%p3827_p11), %s671_s1, 1072  }
  0xd3   : > { %3594 = vsyncadd (%p3827_p11), %s671_s1, 4294966224  ;;  %s2725_s23 = sshll.u32 %s663_s8, 6  ;;  %s2726_s30 = sshll.u32 %s663_s8, 8 }
  0xd4   : > { %s4034_s20 = scalar_lea.vmem [#allocation12], %s2725_s23  ;;  %s689_s25 = scalar_lea.sflag [#allocation14], %s653_s13 }
  0xd5   : > { %s4036_s11 = scalar_lea.vmem [#allocation13], %s2726_s30 }
  0xd6   : > { %3596 = dma.done.wait (%p3827_p11), %s689_s25, 8192  }
  0xd7   : > { %3598 = vsyncadd (%p3827_p11), %s689_s25, 4294959104  ;;  %s4500_s18 = sld [smem:[#allocation28_spill]]  ;;  %s4076_s8 = scalar_lea.vmem [#allocation15], %s2726_s30 }
  0xd8   : > { %s4503_s7 = sld [smem:[#allocation49_spill]]  ;;  %s4508_s17 = sshll.u32 %s4003_s12, 3 }
  0xd9   : > { %s4504_s26 = sld [smem:[#allocation51_spill]] }
  0xda   : > { %s4505_s2 = sld [smem:[#allocation53_spill]] }
  0xdb   : > { %s4506_s6 = sld [smem:[#allocation54_spill]] }
  0xdc   : > { %s4507_s24 = sld [smem:[#allocation55_spill]] }
  0xdd   : > { %p797_p0 = scmp.lt.s32.totalorder %s4500_s18, 1  ;;  %p2730_p11 = scmp.ne.s32.totalorder %s4500_s18, 0 }
  0xdf   : > { %s4044_s9 = scalar_select %p797_p0, %s4500_s18, 1 }
  0xe0   : > { %823 = sbr.rel (%p2730_p11) target bundleno = 231 (0xe7), region = 108 }
  0xe1   : > { %s805_s1 = scalar_lea.vmem %s4503_s7, %s4044_s9  ;;  %s2729_s23 = sshll.u32 %s4044_s9, 2 }
  0xe2   : > { %s4062_s28 = scalar_lea.vmem %s4504_s26, %s2729_s23  ;;  %s812_s4 = scalar_lea.vmem %s4505_s2, %s4044_s9 }
  0xe3   : > { %s815_s22 = scalar_lea.vmem %s4506_s6, %s4044_s9  ;;  %s818_s16 = scalar_lea.vmem %s4507_s24, %s4044_s9 }
  0xe4   : > { %s4080_s7 = scalar_lea.vmem [#allocation16], %s4508_s17 }
  0xe5   : > { %v824_v0 = vld [vmem:[%s4009_s3] sm:$0xff] }
  0xe6   : > { %825 = vst [vmem:[%s4080_s7] sm:$0xff] %v824_v0 }
  0xe7 PF: > { %v3165_v1 = vld [vmem:[%s4022_s14 + $0xac] ss:$12 sps:$4 sm:$0xff]   ;;  %v3167_v2 = vld [vmem:[%s4022_s14 + $0xa8] ss:$12 sps:$4 sm:$0xff]   ;;  %v3660_v3 = vmov 0   ;;  %v3661_v4 = vmov 0.0   ;;  %v862_v29 = vlaneseq }
  0xe8   : > { %1037 = vmatprep.mubr.bf16.mxu0 %v3660_v3  ;;  %2927 = vmatprep.subr.bf16.mxu1 %v3661_v4  ;;  %v3168_v5 = vld [vmem:[%s4022_s14 + $0x94] ss:$12 sps:$4 sm:$0xff]   ;;  %v3170_v6 = vld [vmem:[%s4022_s14 + $0x90] ss:$12 sps:$4 sm:$0xff]   ;;  %v3173_v8 = vld [vmem:[%s4022_s14 + $0x78] ss:$12 sps:$4 sm:$0xff]  }
  0xe9   : > { %1005 = vmatprep.subr.bf16.mxu0 %v3165_v1  ;;  %v3171_v7 = vld [vmem:[%s4022_s14 + $0x7c] ss:$12 sps:$4 sm:$0xff]   ;;  %v3174_v9 = vld [vmem:[%s4022_s14 + $0x64] ss:$12 sps:$4 sm:$0xff]   ;;  %v3176_v10 = vld [vmem:[%s4022_s14 + $0x60] ss:$12 sps:$4 sm:$0xff]  }
  0xea   : > { %1006 = vmatpush1.bf16.msra.mxu0 %v3167_v2  ;;  %v3189_v11 = vld [vmem:[%s4022_s14 + $0xb0] ss:$12 sps:$4 sm:$0xff]   ;;  %v3177_v12 = vld [vmem:[%s4022_s14 + $0x4c] ss:$12 sps:$4 sm:$0xff]   ;;  %v3179_v14 = vld [vmem:[%s4022_s14 + $0x48] ss:$12 sps:$4 sm:$0xff]  }
  0xeb   : > { %1007 = vmatprep.subr.bf16.mxu0 %v3168_v5  ;;  %2928 = vmatpush3.bf16.msra.mxu1 %v3189_v11  ;;  %v3190_v13 = vld [vmem:[%s4022_s14 + $0x98] ss:$12 sps:$4 sm:$0xff]   ;;  %v3180_v15 = vld [vmem:[%s4022_s14 + $0x34] ss:$12 sps:$4 sm:$0xff]   ;;  %v3182_v16 = vld [vmem:[%s4022_s14 + $0x30] ss:$12 sps:$4 sm:$0xff]  }
  0xec   : > { %2929 = vmatprep.subr.bf16.mxu1 %v3661_v4  ;;  %v3191_v17 = vld [vmem:[%s4022_s14 + $0x80] ss:$12 sps:$4 sm:$0xff]   ;;  %v3183_v18 = vld [vmem:[%s4022_s14 + $0x1c] ss:$12 sps:$4 sm:$0xff]   ;;  %v3185_v20 = vld [vmem:[%s4022_s14 + $0x18] ss:$12 sps:$4 sm:$0xff]  }
  0xed   : > { %v3192_v19 = vld [vmem:[%s4022_s14 + $0x68] ss:$12 sps:$4 sm:$0xff]   ;;  %v3186_v21 = vld [vmem:[%s4022_s14 + $0x4] ss:$12 sps:$4 sm:$0xff]   ;;  %v3188_v23 = vld [vmem:[%s4022_s14] ss:$12 sps:$4 sm:$0xff]  }
  0xee   : > { %1008 = vmatpush1.bf16.msra.mxu0 %v3170_v6  ;;  %v3193_v22 = vld [vmem:[%s4022_s14 + $0x50] ss:$12 sps:$4 sm:$0xff]   ;;  %v3194_v25 = vld [vmem:[%s4022_s14 + $0x38] ss:$12 sps:$4 sm:$0xff]   ;;  %v3195_v27 = vld [vmem:[%s4022_s14 + $0x20] ss:$12 sps:$4 sm:$0xff]  }
  0xef   : > { %1009 = vmatprep.subr.bf16.mxu0 %v3171_v7  ;;  %2930 = vmatpush3.bf16.msra.mxu1 %v3190_v13  ;;  %v4112_v24 = vld [vmem:[%s4080_s7] sm:$0xff]  ;;  %vm3662_vm0 = vmmov 0   ;;  %v4131_v30 = vshrl.u32 %v862_v29, 7  ;;  %v860_v33 = vld [vmem:[%s4028_s29] sm:$0x7]  ;;  %vm1141_vm1 = vcmask 261120  }
  0xf0   : > { %2931 = vmatprep.subr.bf16.mxu1 %v3661_v4  ;;  %v827_v26 = vpack.c.bf16 %v4112_v24, %v4112_v24  ;;  %v3196_v28 = vld [vmem:[%s4022_s14 + $0x8] ss:$12 sps:$4 sm:$0xff]   ;;  %2943 = vmatprep.mubr.msk.bf16.mxu1 %vm3662_vm0, %v3661_v4  ;;  %s3663_s0 = smov 64   ;;  %s3664_s2 = smov 96   ;;  %vm1382_vm2 = vcmask 1043456   ;;  %vm1326_vm3 = vcmask 64512  }
  0xf1   : > { %v868_v31 = vsub.s32 1, %v4131_v30  ;;  %v864_v32 = vsub.s32 0, %v4131_v30  ;;  %s3665_s10 = smov 32   ;;  %v872_v47 = vsub.s32 2, %v4131_v30  ;;  %s4509_s26 = scalar_lea.vmem [#allocation7], %s4003_s12  ;;  %vm1569_vm4 = vcmask 523520  }
  0xf2   : > { %1010 = vmatpush1.bf16.msra.mxu0 %v3173_v8  ;;  %v2755_v11 = vld [vmem:[%s4509_s26] ss:$0 sm:$0xff]  ;;  %vm1575_vm5 = vcmask 785920   ;;  %vm1581_vm6 = vcmask 1048320   ;;  %s4510_s14 = sld [smem:[#allocation47_spill]]  ;;  %s2419_s30 = scalar_lea.sflag [#allocation6], %s4003_s12 }
  0xf3   : > { %1011 = vmatprep.subr.bf16.mxu0 %v3174_v9  ;;  %2932 = vmatpush3.bf16.msra.mxu1 %v3191_v17  ;;  %v869_v34 = vrot.slane %v860_v33, %v868_v31  ;;  %v865_v36 = vrot.slane %v860_v33, %v864_v32  ;;  %v873_v50 = vrot.slane %v860_v33, %v872_v47  ;;  %s4516_s27 = sld [smem:[#allocation29_spill]] }
  0xf4   : > { %2933 = vmatprep.subr.bf16.mxu1 %v3661_v4  ;;  %s4520_s15 = sld [smem:[#allocation56_spill]] }
  0xf6   : > { %1012 = vmatpush1.bf16.msra.mxu0 %v3176_v10 }
  0xf7   : > { %1013 = vmatprep.subr.bf16.mxu0 %v3177_v12  ;;  %2934 = vmatpush3.bf16.msra.mxu1 %v3192_v19 }
  0xf8   : > { %2935 = vmatprep.subr.bf16.mxu1 %v3661_v4  ;;  %s4511_s29 = scalar_lea.vmem %s4510_s14, %s4044_s9 }
  0xfa   : > { %1014 = vmatpush1.bf16.msra.mxu0 %v3179_v14  ;;  %s4521_s14 = smov %s4520_s15 }
  0xfb   : > { %1015 = vmatprep.subr.bf16.mxu0 %v3180_v15  ;;  %2936 = vmatpush3.bf16.msra.mxu1 %v3193_v22 }
  0xfc   : > { %2937 = vmatprep.subr.bf16.mxu1 %v3661_v4 }
  0xfe   : > { %1016 = vmatpush1.bf16.msra.mxu0 %v3182_v16 }
  0xff   : > { %1017 = vmatprep.subr.bf16.mxu0 %v3183_v18  ;;  %2938 = vmatpush3.bf16.msra.mxu1 %v3194_v25 }
 0x100   : > { %2939 = vmatprep.subr.bf16.mxu1 %v3661_v4 }
 0x102   : > { %1018 = vmatpush1.bf16.msra.mxu0 %v3185_v20 }
 0x103   : > { %1019 = vmatprep.subr.bf16.mxu0 %v3186_v21  ;;  %2940 = vmatpush3.bf16.msra.mxu1 %v3195_v27 }
 0x104   : > { %2941 = vmatprep.subr.bf16.mxu1 %v3661_v4 }
 0x106   : > { %1020 = vmatpush1.bf16.msra.mxu0 %v3188_v23 }
 0x107   : > { %2971 = vmatprep.subr.bf16.mxu0 %v3661_v4  ;;  %2942 = vmatpush3.bf16.msra.mxu1 %v3196_v28 }
 0x108   : > { %2947 = vmatprep.subr.bf16.mxu1 %v3661_v4 }
 0x109   : > { %1038 = vmatmul.mubr.bf16.vlgmr.msra.gmra.mxu0 %v827_v26 }
 0x10a   : > { %2973 = vmatprep.mubr.msk.bf16.mxu0 %vm3662_vm0, %v3661_v4  ;;  %2944 = vmatmul.mubr.bf16.vlgmr.msra.gmra.mxu1 %v827_v26 }
 0x10b   : > { %2949 = vmatprep.mubr.msk.bf16.mxu1 %vm3662_vm0, %v3661_v4 }
 0x1c9   : > { %v1039_v35 = vpop.f32.mrf.mxu0 }
 0x1ca   : > { %v1040_v40 = vadd.f32 %v1039_v35, %v865_v36  ;;  %v1080_v46 = vpop.f32.mrf.mxu1 }
 0x1cb   : > { %v1041_v37 = vpop.f32.mrf.mxu0  ;;  %v4154_v52 = vadd.f32 %v1080_v46, %v873_v50 }
 0x1cc   : > { %v1042_v38 = vadd.f32 %v1041_v37, %v869_v34  ;;  %v1123_v44 = vmul.f32 0.17677669, %v1040_v40  ;;  %v2945_v48 = vpop.f32.mrf.mxu1 }
 0x1cd   : > { %v1043_v39 = vpop.f32.mrf.mxu0  ;;  %v1375_v53 = vpack.c.bf16 %v4154_v52, %v4154_v52 }
 0x1ce   : > { %1106 = vrot.lane.b32.xlu1 %v1042_v38, %s3663_s0  ;;  %1103 = vrot.lane.b32.xlu0 %v1042_v38, %s3664_s2  ;;  %v1131_v41 = vpack.c.bf16 %v1042_v38, %v1042_v38  ;;  %v1127_v45 = vpack.c.bf16 %v1123_v44, %v1123_v44  ;;  %v1083_v49 = vpop.f32.mrf.mxu1 }
 0x1cf   : > { %v1044_v42 = vpop.f32.mrf.mxu0  ;;  %v1384_v54 = vsel %vm1382_vm2, %v1375_v53, 0 }
 0x1d0   : > { %v1146_v43 = vsel %vm1141_vm1, %v1131_v41, 0  ;;  %v2946_v51 = vpop.f32.mrf.mxu1  ;;  %2972 = vmatpush3.bf16.msra.mxu0 %v1384_v54 }
 0x1d1   : > { %2948 = vmatpush3.bf16.xpose.msra.mxu1 %v1146_v43  ;;  %2983 = vmatprep.subr.bf16.mxu0 %v3661_v4 }
 0x1d2   : > { %1095 = vrot.lane.b32.xlu1 %v1040_v40, %s3663_s0  ;;  %1092 = vrot.lane.b32.xlu0 %v1040_v40, %s3664_s2 }
 0x1d3   : > { %2953 = vmatprep.subr.bf16.mxu1 %v3661_v4 }
 0x1d6   : > { %1098 = vrot.lane.b32.xlu1 %v1040_v40, %s3665_s10  ;;  %1109 = vrot.lane.b32.xlu0 %v1042_v38, %s3665_s10 }
 0x1d8   : > { %2950 = vmatmul.mubr.msk.bf16.vlgmr.msra.gmra.mxu1 %vm1141_vm1, %v1127_v45 }
 0x1d9   : > { %2955 = vmatprep.mubr.msk.bf16.mxu1 %vm3662_vm0, %v3661_v4 }
 0x240   : > { %v1104_v55 = vpop.permute.xlu0 %1103  ;;  %v1107_v58 = vpop.permute.xlu1 %1106 }
 0x241   : > { %v1132_v56 = vpack.c.bf16 %v1104_v55, %v1104_v55  ;;  %v1133_v61 = vpack.c.bf16 %v1107_v58, %v1107_v58 }
 0x243   : > { %v1192_v57 = vsel %vm1141_vm1, %v1132_v56, 0  ;;  %v1238_v0 = vsel %vm1141_vm1, %v1133_v61, 0 }
 0x244   : > { %v1093_v59 = vpop.permute.xlu0 %1092  ;;  %2954 = vmatpush3.bf16.xpose.msra.mxu1 %v1192_v57  ;;  %v1096_v63 = vpop.permute.xlu1 %1095 }
 0x245   : > { %v1124_v60 = vmul.f32 0.17677669, %v1093_v59  ;;  %2959 = vmatprep.subr.bf16.mxu1 %v3661_v4  ;;  %v1125_v2 = vmul.f32 0.17677669, %v1096_v63 }
 0x247   : > { %v1128_v62 = vpack.c.bf16 %v1124_v60, %v1124_v60  ;;  %v1129_v6 = vpack.c.bf16 %v1125_v2, %v1125_v2 }
 0x248   : > { %v1110_v1 = vpop.permute.xlu0 %1109  ;;  %v1099_v7 = vpop.permute.xlu1 %1098 }
 0x249   : > { %v1134_v5 = vpack.c.bf16 %v1110_v1, %v1110_v1  ;;  %v1126_v9 = vmul.f32 0.17677669, %v1099_v7 }
 0x24b   : > { %2956 = vmatmul.mubr.msk.bf16.vlgmr.msra.gmra.mxu1 %vm1141_vm1, %v1128_v62  ;;  %v1284_v8 = vsel %vm1141_vm1, %v1134_v5, 0  ;;  %v1130_v10 = vpack.c.bf16 %v1126_v9, %v1126_v9 }
 0x24c   : > { %2960 = vmatpush3.bf16.xpose.msra.mxu1 %v1238_v0  ;;  %2961 = vmatprep.mubr.msk.bf16.mxu1 %vm3662_vm0, %v3661_v4 }
 0x24d   : > { %2965 = vmatprep.subr.bf16.mxu1 %v3661_v4 }
 0x253   : > { %2962 = vmatmul.mubr.msk.bf16.vlgmr.msra.gmra.mxu1 %vm1141_vm1, %v1129_v6 }
 0x254   : > { %2966 = vmatpush3.bf16.xpose.msra.mxu1 %v1284_v8  ;;  %2967 = vmatprep.mubr.msk.bf16.mxu1 %vm3662_vm0, %v3661_v4 }
 0x255   : > { %2977 = vmatprep.subr.bf16.mxu1 %v3661_v4 }
 0x25b   : > { %2968 = vmatmul.mubr.msk.bf16.vlgmr.msra.gmra.mxu1 %vm1141_vm1, %v1130_v10 }
 0x25c   : > { %2979 = vmatprep.mubr.msk.bf16.mxu1 %vm3662_vm0, %v3661_v4 }
 0x298   : > { %v1182_v12 = vpop.f32.mrf.mxu1 }
 0x299   : > { %v1183_v13 = vadd.f32 %v2755_v11, %v1182_v12 }
 0x29a   : > { %v2951_v14 = vpop.f32.mrf.mxu1 }
 0x29b   : > { %v1327_v15 = vsel %vm1326_vm3, %v1183_v13, -inf }
 0x29c   : > { %1328 = vmax.xlane.f32.xlu0 %v1327_v15  ;;  %v1185_v16 = vpop.f32.mrf.mxu1 }
 0x29e   : > { %v2952_v17 = vpop.f32.mrf.mxu1 }
 0x30b   : > { %v1228_v18 = vpop.f32.mrf.mxu1 }
 0x30c   : > { %v1229_v19 = vadd.f32 %v2755_v11, %v1228_v18 }
 0x30d   : > { %v2957_v20 = vpop.f32.mrf.mxu1 }
 0x30e   : > { %v1330_v21 = vsel %vm1326_vm3, %v1229_v19, -inf }
 0x30f   : > { %1331 = vmax.xlane.f32.xlu1 %v1330_v21  ;;  %v1231_v22 = vpop.f32.mrf.mxu1 }
 0x311   : > { %v2958_v23 = vpop.f32.mrf.mxu1 }
 0x313   : > { %v1274_v25 = vpop.f32.mrf.mxu1 }
 0x314   : > { %v1275_v26 = vadd.f32 %v2755_v11, %v1274_v25  ;;  %v3197_v25 = vld [vmem:[%s4034_s20 + $0x38] sm:$0xff]  }
 0x315   : > { %v2963_v27 = vpop.f32.mrf.mxu1 }
 0x316   : > { %v1333_v28 = vsel %vm1326_vm3, %v1275_v26, -inf  ;;  %v3198_v27 = vld [vmem:[%s4034_s20 + $0x30] sm:$0xff]  }
 0x317   : > { %1334 = vmax.xlane.f32.xlu0 %v1333_v28  ;;  %v1277_v29 = vpop.f32.mrf.mxu1 }
 0x319   : > { %v2964_v33 = vpop.f32.mrf.mxu1 }
 0x31b   : > { %v1320_v34 = vpop.f32.mrf.mxu1 }
 0x31c   : > { %v1321_v35 = vadd.f32 %v2755_v11, %v1320_v34  ;;  %v3199_v34 = vld [vmem:[%s4034_s20 + $0x28] sm:$0xff]  }
 0x31d   : > { %v2969_v36 = vpop.f32.mrf.mxu1 }
 0x31e   : > { %v1336_v37 = vsel %vm1326_vm3, %v1321_v35, -inf  ;;  %v3201_v36 = vld [vmem:[%s4034_s20 + $0x18] sm:$0xff]  }
 0x31f   : > { %1337 = vmax.xlane.f32.xlu0 %v1336_v37  ;;  %v1323_v38 = vpop.f32.mrf.mxu1  ;;  %v3202_v37 = vld [vmem:[%s4034_s20 + $0x10] sm:$0xff]  }
 0x320   : > { %1114 = vrot.lane.b32.xlu1 %v4154_v52, %s3664_s2 }
 0x321   : > { %v2970_v39 = vpop.f32.mrf.mxu1 }
 0x325   : > { %v1329_v40 = vpop.xlane.xlu0 %1328 }
 0x326   : > { %v1339_v41 = vsub.f32 %v1183_v13, %v1329_v40 }
 0x328   : > { %v1343_v42 = vmul.f32 1.442695, %v1339_v41  ;;  %v3203_v41 = vld [vmem:[%s4034_s20 + $0x8] sm:$0xff]  }
 0x32a   : > { %3285 = vpow2.f32 %v1343_v42 }
 0x337   : > { %v3286_v43 = vpop.eup %3285 }
 0x338   : > { %v1351_v44 = vsel %vm1326_vm3, %v3286_v43, 0.0 }
 0x344   : > { %1352 = vadd.xlane.f32.xlu1 %v1351_v44 }
 0x398   : > { %v1332_v45 = vpop.xlane.xlu1 %1331 }
 0x399   : > { %v1340_v46 = vsub.f32 %v1229_v19, %v1332_v45 }
 0x39b   : > { %v1345_v48 = vmul.f32 1.442695, %v1340_v46 }
 0x39c   : > { %v1115_v49 = vpop.permute.xlu1 %1114 }
 0x39d   : > { %3287 = vpow2.f32 %v1345_v48  ;;  %v1376_v50 = vpack.c.bf16 %v1115_v49, %v1115_v49 }
 0x39f   : > { %v1430_v51 = vsel %vm1382_vm2, %v1376_v50, 0 }
 0x3a0   : > { %2978 = vmatpush3.bf16.msra.mxu1 %v1430_v51  ;;  %v1335_v53 = vpop.xlane.xlu0 %1334 }
 0x3a1   : > { %v1341_v54 = vsub.f32 %v1275_v26, %v1335_v53  ;;  %2989 = vmatprep.subr.bf16.mxu1 %v3661_v4 }
 0x3a3   : > { %v1347_v55 = vmul.f32 1.442695, %v1341_v54 }
 0x3a5   : > { %3289 = vpow2.f32 %v1347_v55 }
 0x3a8   : > { %v1338_v56 = vpop.xlane.xlu0 %1337 }
 0x3a9   : > { %v1342_v57 = vsub.f32 %v1321_v35, %v1338_v56  ;;  %v3200_v35 = vld [vmem:[%s4034_s20 + $0x20] sm:$0xff]  }
 0x3aa   : > { %v3288_v58 = vpop.eup %3287 }
 0x3ab   : > { %v1349_v59 = vmul.f32 1.442695, %v1342_v57  ;;  %v1354_v60 = vsel %vm1326_vm3, %v3288_v58, 0.0 }
 0x3ac   : > { %1355 = vadd.xlane.f32.xlu0 %v1354_v60 }
 0x3ad   : > { %3291 = vpow2.f32 %v1349_v59 }
 0x3b2   : > { %v3290_v61 = vpop.eup %3289 }
 0x3b3   : > { %v1357_v62 = vsel %vm1326_vm3, %v3290_v61, 0.0 }
 0x3b4   : > { %1358 = vadd.xlane.f32.xlu1 %v1357_v62 }
 0x3ba   : > { %v3292_v63 = vpop.eup %3291 }
 0x3bb   : > { %v1360_v0 = vsel %vm1326_vm3, %v3292_v63, 0.0 }
 0x3bc   : > { %1361 = vadd.xlane.f32.xlu0 %v1360_v0 }
 0x3c5   : > { %1120 = vrot.lane.b32.xlu1 %v4154_v52, %s3665_s10 }
 0x3cd   : > { %v1353_v1 = vpop.xlane.xlu1 %1352 }
 0x3ce   : > { %3293 = vrcp.f32 %v1353_v1  ;;  %v3205_v1 = vld [vmem:[%s4036_s11 + $0xe0] ss:$16 sps:$4 sm:$0xff]  }
 0x3d2   : > { %1117 = vrot.lane.b32.xlu0 %v4154_v52, %s3663_s0 }
 0x3db   : > { %v3294_v2 = vpop.eup %3293 }
 0x3dc   : > { %v1367_v5 = vmul.f32 %v3294_v2, %v3286_v43  ;;  %v3204_v43 = vld [vmem:[%s4034_s20] sm:$0xff]  }
 0x3dd   : > { %v3207_v2 = vld [vmem:[%s4036_s11 + $0xe4] ss:$16 sps:$4 sm:$0xff]  }
 0x3de   : > { %v1371_v6 = vpack.c.bf16 %v1367_v5, %v1367_v5  ;;  %v3208_v5 = vld [vmem:[%s4036_s11 + $0xe8] ss:$16 sps:$4 sm:$0xff]  }
 0x3e0   : > { %2974 = vmatmul.mubr.msk.bf16.vlgmr.msra.gmra.mxu0 %vm1326_vm3, %v1371_v6  ;;  %v3210_v6 = vld [vmem:[%s4036_s11 + $0xec] ss:$16 sps:$4 sm:$0xff]  }
 0x3e1   : > { %2985 = vmatprep.mubr.msk.bf16.mxu0 %vm3662_vm0, %v3661_v4 }
 0x435   : > { %v1356_v7 = vpop.xlane.xlu0 %1355 }
 0x436   : > { %3295 = vrcp.f32 %v1356_v7  ;;  %v3216_v7 = vld [vmem:[%s4036_s11 + $0xcc] ss:$16 sps:$4 sm:$0xff]  }
 0x43d   : > { %v1359_v8 = vpop.xlane.xlu1 %1358 }
 0x43e   : > { %3297 = vrcp.f32 %v1359_v8  ;;  %v3211_v8 = vld [vmem:[%s4036_s11 + $0xc0] ss:$16 sps:$4 sm:$0xff]  }
 0x441   : > { %v1121_v9 = vpop.permute.xlu1 %1120 }
 0x442   : > { %v1378_v11 = vpack.c.bf16 %v1121_v9, %v1121_v9 }
 0x443   : > { %v3296_v10 = vpop.eup %3295 }
 0x444   : > { %v1368_v12 = vmul.f32 %v3296_v10, %v3288_v58  ;;  %v1522_v52 = vsel %vm1382_vm2, %v1378_v11, 0  ;;  %v2764_v58 = vld [vmem:[%s4511_s29] ss:$0 sm:$0xff] }
 0x445   : > { %v1362_v13 = vpop.xlane.xlu0 %1361 }
 0x446   : > { %3299 = vrcp.f32 %v1362_v13  ;;  %v1372_v14 = vpack.c.bf16 %v1368_v12, %v1368_v12  ;;  %v3219_v13 = vld [vmem:[%s4036_s11 + $0xa4] ss:$16 sps:$4 sm:$0xff]  }
 0x448   : > { %2980 = vmatmul.mubr.msk.bf16.vlgmr.msra.gmra.mxu1 %vm1326_vm3, %v1372_v14  ;;  %v3222_v14 = vld [vmem:[%s4036_s11 + $0xac] ss:$16 sps:$4 sm:$0xff]  }
 0x449   : > { %2990 = vmatpush3.bf16.msra.mxu1 %v1522_v52  ;;  %v1118_v15 = vpop.permute.xlu0 %1117  ;;  %2991 = vmatprep.mubr.msk.bf16.mxu1 %vm3662_vm0, %v3661_v4  ;;  %v3217_v52 = vld [vmem:[%s4036_s11 + $0xa0] ss:$16 sps:$4 sm:$0xff]  }
 0x44a   : > { %v1377_v16 = vpack.c.bf16 %v1118_v15, %v1118_v15  ;;  %1940 = vmatprep.subr.bf16.mxu1 %v3207_v2  ;;  %v3220_v15 = vld [vmem:[%s4036_s11 + $0xa8] ss:$16 sps:$4 sm:$0xff]   ;;  %v3268_v2 = vld [vmem:[%s4076_s8 + $0xa0] sm:$0xff]  }
 0x44b   : > { %v3298_v17 = vpop.eup %3297 }
 0x44c   : > { %v1476_v18 = vsel %vm1382_vm2, %v1377_v16, 0  ;;  %v1369_v19 = vmul.f32 %v3298_v17, %v3290_v61  ;;  %v3223_v16 = vld [vmem:[%s4036_s11 + $0x80] ss:$16 sps:$4 sm:$0xff]   ;;  %v3225_v17 = vld [vmem:[%s4036_s11 + $0x84] ss:$16 sps:$4 sm:$0xff]  }
 0x44d   : > { %2984 = vmatpush3.bf16.msra.mxu0 %v1476_v18  ;;  %v3226_v18 = vld [vmem:[%s4036_s11 + $0x88] ss:$16 sps:$4 sm:$0xff]  }
 0x44e   : > { %v1373_v20 = vpack.c.bf16 %v1369_v19, %v1369_v19  ;;  %2995 = vmatprep.subr.bf16.mxu0 %v3661_v4  ;;  %v3228_v19 = vld [vmem:[%s4036_s11 + $0x8c] ss:$16 sps:$4 sm:$0xff]  }
 0x450   : > { %2986 = vmatmul.mubr.msk.bf16.vlgmr.msra.gmra.mxu0 %vm1326_vm3, %v1373_v20  ;;  %v3231_v20 = vld [vmem:[%s4036_s11 + $0x64] ss:$16 sps:$4 sm:$0xff]  }
 0x451   : > { %3011 = vmatprep.mubr.msk.bf16.mxu0 %vm3662_vm0, %v3661_v4  ;;  %2996 = vmatpush3.bf16.msra.mxu0 %v3197_v25  ;;  %v3237_v25 = vld [vmem:[%s4036_s11 + $0x44] ss:$16 sps:$4 sm:$0xff]  }
 0x452   : > { %2997 = vmatprep.subr.bf16.mxu0 %v3661_v4 }
 0x453   : > { %v3300_v21 = vpop.eup %3299 }
 0x454   : > { %v1370_v22 = vmul.f32 %v3300_v21, %v3292_v63  ;;  %v3234_v21 = vld [vmem:[%s4036_s11 + $0x6c] ss:$16 sps:$4 sm:$0xff]  }
 0x455   : > { %2998 = vmatpush3.bf16.msra.mxu0 %v3198_v27  ;;  %v3235_v27 = vld [vmem:[%s4036_s11 + $0x40] ss:$16 sps:$4 sm:$0xff]  }
 0x456   : > { %v1374_v23 = vpack.c.bf16 %v1370_v22, %v1370_v22  ;;  %2999 = vmatprep.subr.bf16.mxu0 %v3661_v4  ;;  %v3229_v22 = vld [vmem:[%s4036_s11 + $0x60] ss:$16 sps:$4 sm:$0xff]  }
 0x458   : > { %2992 = vmatmul.mubr.msk.bf16.vlgmr.msra.gmra.mxu1 %vm1326_vm3, %v1374_v23  ;;  %v3232_v23 = vld [vmem:[%s4036_s11 + $0x68] ss:$16 sps:$4 sm:$0xff]  }
 0x459   : > { %1972 = vmatprep.mubr.bf16.mxu1 %v3660_v3  ;;  %3000 = vmatpush3.bf16.msra.mxu0 %v3199_v34  ;;  %v3241_v34 = vld [vmem:[%s4036_s11 + $0x20] ss:$16 sps:$4 sm:$0xff]  }
 0x45a   : > { %3001 = vmatprep.subr.bf16.mxu0 %v3661_v4  ;;  %1941 = vmatpush1.bf16.msra.mxu1 %v3205_v1  ;;  %v3267_v1 = vld [vmem:[%s4076_s8 + $0x20] sm:$0xff]  }
 0x45d   : > { %3002 = vmatpush3.bf16.msra.mxu0 %v3200_v35  ;;  %v3244_v35 = vld [vmem:[%s4036_s11 + $0x28] ss:$16 sps:$4 sm:$0xff]  }
 0x45e   : > { %3003 = vmatprep.subr.bf16.mxu0 %v3661_v4 }
 0x461   : > { %3004 = vmatpush3.bf16.msra.mxu0 %v3201_v36  ;;  %v3249_v36 = vld [vmem:[%s4036_s11 + $0x4] ss:$16 sps:$4 sm:$0xff]  }
 0x462   : > { %3005 = vmatprep.subr.bf16.mxu0 %v3661_v4 }
 0x465   : > { %3006 = vmatpush3.bf16.msra.mxu0 %v3202_v37  ;;  %v3252_v37 = vld [vmem:[%s4036_s11 + $0xc] ss:$16 sps:$4 sm:$0xff]  }
 0x466   : > { %3007 = vmatprep.subr.bf16.mxu0 %v3661_v4 }
 0x469   : > { %3008 = vmatpush3.bf16.msra.mxu0 %v3203_v41  ;;  %v3254_v41 = vld [vmem:[%s4076_s8 + $0xf8] sm:$0xff]  }
 0x46a   : > { %3009 = vmatprep.subr.bf16.mxu0 %v3661_v4 }
 0x46d   : > { %3010 = vmatpush3.bf16.msra.mxu0 %v3204_v43 }
 0x46e   : > { %1981 = vmatprep.subr.bf16.mxu0 %v3210_v6  ;;  %v3270_v6 = vld [vmem:[%s4076_s8 + $0xd8] sm:$0xff]  }
 0x4a0   : > { %v1420_v26 = vpop.f32.mrf.mxu0 }
 0x4a1   : > { %1564 = vst.msk [vmem:[#allocation3] sm:$0xff] %vm1141_vm1, %v1420_v26  ;;  %v3240_v26 = vld [vmem:[%s4036_s11 + $0x4c] ss:$16 sps:$4 sm:$0xff]  }
 0x4a2   : > { %v2975_v28 = vpop.f32.mrf.mxu0 }
 0x4a3   : > { %v3238_v28 = vld [vmem:[%s4036_s11 + $0x48] ss:$16 sps:$4 sm:$0xff]  }
 0x4a4   : > { %v1423_v29 = vpop.f32.mrf.mxu0 }
 0x4a5   : > { %v3243_v29 = vld [vmem:[%s4036_s11 + $0x24] ss:$16 sps:$4 sm:$0xff]  }
 0x4a6   : > { %v2976_v33 = vpop.f32.mrf.mxu0 }
 0x4a7   : > { %v3246_v33 = vld [vmem:[%s4036_s11 + $0x2c] ss:$16 sps:$4 sm:$0xff]  }
 0x508   : > { %v1466_v38 = vpop.f32.mrf.mxu1 }
 0x509   : > { %1566 = vrot.lane.b32.xlu1 %v1466_v38, %s3665_s10  ;;  %v3247_v38 = vld [vmem:[%s4036_s11] ss:$16 sps:$4 sm:$0xff]   ;;  %s2432_s10 = sshll.u32 %s4080_s7, 4  ;;  %s2433_s10 = int_to_ptr.vmem [resolvable:$true] %s2432_s10 }
 0x50a   : > { %v2981_v39 = vpop.f32.mrf.mxu1  ;;  %s3509_s20 = scalar_lea.vmem %s2433_s10, 128 }
 0x50b   : > { %v3250_v39 = vld [vmem:[%s4036_s11 + $0x8] ss:$16 sps:$4 sm:$0xff]   ;;  %p3510_p4 = scmp.ne.s32.totalorder %s2433_s10, %s3509_s20 }
 0x50c   : > { %v1469_v40 = vpop.f32.mrf.mxu1 }
 0x50d   : > { %v3253_v40 = vld [vmem:[%s4076_s8 + $0x78] sm:$0xff]   ;;  %p3511_p9 = pnand %p3510_p4, %p3834_p12 }
 0x50e   : > { %v2982_v42 = vpop.f32.mrf.mxu1 }
 0x50f   : > { %p3512_p1 = pneg %p3511_p9 }
 0x510   : > { %v1512_v44 = vpop.f32.mrf.mxu0 }
 0x511   : > { %1572 = vrot.lane.b32.xlu0 %v1512_v44, %s3663_s0 }
 0x512   : > { %v2987_v45 = vpop.f32.mrf.mxu0 }
 0x514   : > { %v1515_v46 = vpop.f32.mrf.mxu0 }
 0x516   : > { %v2988_v48 = vpop.f32.mrf.mxu0 }
 0x518   : > { %v1558_v49 = vpop.f32.mrf.mxu1 }
 0x519   : > { %1578 = vrot.lane.b32.xlu1 %v1558_v49, %s3664_s2  ;;  %v2774_v49 = vld [vmem:[%s805_s1] ss:$0 sm:$0xff]  ;;  %s2843_s2 = sshll.u32 %s4516_s27, 7 }
 0x51a   : > { %v2993_v50 = vpop.f32.mrf.mxu1  ;;  %s2430_s29 = scalar_lea.hbm %s4520_s15, %s2843_s2 }
 0x51c   : > { %v1561_v51 = vpop.f32.mrf.mxu1 }
 0x51e   : > { %v2994_v53 = vpop.f32.mrf.mxu1 }
 0x51f   : > { %v3255_v53 = vld [vmem:[%s4076_s8 + $0x38] sm:$0xff]  }
 0x57b   : > { %v1567_v54 = vpop.permute.xlu1 %1566 }
 0x57c   : > { %1570 = vst.msk [vmem:[#allocation3] sm:$0xff] %vm1569_vm4, %v1567_v54  ;;  %v3256_v54 = vld [vmem:[%s4076_s8 + $0xb8] sm:$0xff]  }
 0x583   : > { %v1573_v55 = vpop.permute.xlu0 %1572 }
 0x584   : > { %1576 = vst.msk [vmem:[#allocation3] sm:$0xff] %vm1575_vm5, %v1573_v55 }
 0x58b   : > { %v1579_v4 = vpop.permute.xlu1 %1578 }
 0x58c   : > { %1582 = vst.msk [vmem:[#allocation3] sm:$0xff] %vm1581_vm6, %v1579_v4  ;;  %v3257_v4 = vld [vmem:[%s4076_s8 + $0x70] sm:$0xff]  }
 0x593   : > { %v1583_v56 = vld [vmem:[#allocation3] sm:$0xff] }
 0x594   : > { %v1584_v57 = vpack.c.bf16 %v1583_v56, %v1583_v56  ;;  %v3258_v56 = vld [vmem:[%s4076_s8 + $0xf0] sm:$0xff]  }
 0x596   : > { %3012 = vmatmul.mubr.bf16.vlgmr.msra.gmra.mxu0 %v1584_v57  ;;  %v3259_v57 = vld [vmem:[%s4076_s8 + $0x30] sm:$0xff]  }
 0x597   : > { %2013 = vmatprep.mubr.bf16.mxu0 %v3660_v3  ;;  %v3213_v3 = vld [vmem:[%s4036_s11 + $0xc4] ss:$16 sps:$4 sm:$0xff]   ;;  %1982 = vmatpush1.bf16.msra.mxu0 %v3208_v5  ;;  %v3269_v5 = vld [vmem:[%s4076_s8 + $0x58] sm:$0xff]  }
 0x598   : > { %1942 = vmatprep.subr.bf16.mxu1 %v3213_v3  ;;  %1983 = vmatprep.subr.bf16.mxu0 %v3216_v7  ;;  %v3271_v3 = vld [vmem:[%s4076_s8 + $0x18] sm:$0xff]  }
 0x599   : > { %1943 = vmatpush1.bf16.msra.mxu1 %v3211_v8  ;;  %v3272_v7 = vld [vmem:[%s4076_s8 + $0x98] sm:$0xff]   ;;  %v3273_v8 = vld [vmem:[%s4076_s8 + $0x50] sm:$0xff]  }
 0x59a   : > { %1944 = vmatprep.subr.bf16.mxu1 %v3219_v13  ;;  %v3279_v13 = vld [vmem:[%s4076_s8 + $0x8] sm:$0xff]  }
 0x59d   : > { %1945 = vmatpush1.bf16.msra.mxu1 %v3217_v52  ;;  %v3281_v52 = vld [vmem:[%s4076_s8 + $0x40] sm:$0xff]  }
 0x59e   : > { %1946 = vmatprep.subr.bf16.mxu1 %v3225_v17  ;;  %v3284_v17 = vld [vmem:[%s4076_s8 + $0x80] sm:$0xff]  }
 0x5a1   : > { %1947 = vmatpush1.bf16.msra.mxu1 %v3223_v16  ;;  %v3283_v16 = vld [vmem:[%s4076_s8] sm:$0xff]  }
 0x5a2   : > { %1948 = vmatprep.subr.bf16.mxu1 %v3231_v20 }
 0x5a5   : > { %1949 = vmatpush1.bf16.msra.mxu1 %v3229_v22 }
 0x5a6   : > { %1950 = vmatprep.subr.bf16.mxu1 %v3237_v25 }
 0x5a9   : > { %1951 = vmatpush1.bf16.msra.mxu1 %v3235_v27 }
 0x5aa   : > { %1952 = vmatprep.subr.bf16.mxu1 %v3243_v29 }
 0x5ad   : > { %1953 = vmatpush1.bf16.msra.mxu1 %v3241_v34 }
 0x5ae   : > { %1954 = vmatprep.subr.bf16.mxu1 %v3249_v36 }
 0x5b1   : > { %1955 = vmatpush1.bf16.msra.mxu1 %v3247_v38 }
 0x5b2   : > { %2883 = vmatprep.subr.bf16.mxu1 %v3253_v40 }
 0x656   : > { %v1690_v59 = vpop.f32.mrf.mxu0 }
 0x657   : > { %v1691_v60 = vadd.f32 %v2764_v58, %v1690_v59  ;;  %v3260_v58 = vld [vmem:[%s4076_s8 + $0xb0] sm:$0xff]   ;;  %v3261_v59 = vld [vmem:[%s4076_s8 + $0x68] sm:$0xff]  }
 0x658   : > { %v3013_v61 = vpop.f32.mrf.mxu0 }
 0x659   : > { %v1696_v62 = vadd.f32 %v1691_v60, %v4112_v24  ;;  %v3214_v24 = vld [vmem:[%s4036_s11 + $0xc8] ss:$16 sps:$4 sm:$0xff]   ;;  %s4512_s11 = sld [smem:[#allocation48_spill]] }
 0x65a   : > { %v1693_v63 = vpop.f32.mrf.mxu0  ;;  %1984 = vmatpush1.bf16.msra.mxu0 %v3214_v24  ;;  %v3262_v60 = vld [vmem:[%s4076_s8 + $0xe8] sm:$0xff]   ;;  %v3274_v24 = vld [vmem:[%s4076_s8 + $0xd0] sm:$0xff]  }
 0x65b   : > { %1699 = vadd.xlane.f32.xlu0 %v1696_v62  ;;  %1985 = vmatprep.subr.bf16.mxu0 %v3222_v14  ;;  %v3263_v61 = vld [vmem:[%s4076_s8 + $0x28] sm:$0xff]   ;;  %v3265_v63 = vld [vmem:[%s4076_s8 + $0x60] sm:$0xff]  }
 0x65c   : > { %v3014_v0 = vpop.f32.mrf.mxu0  ;;  %v3280_v14 = vld [vmem:[%s4076_s8 + $0x88] sm:$0xff]  }
 0x65d   : > { %v3266_v0 = vld [vmem:[%s4076_s8 + $0xe0] sm:$0xff]  }
 0x65e   : > { %1986 = vmatpush1.bf16.msra.mxu0 %v3220_v15  ;;  %v3282_v15 = vld [vmem:[%s4076_s8 + $0xc0] sm:$0xff]  }
 0x65f   : > { %1987 = vmatprep.subr.bf16.mxu0 %v3228_v19  ;;  %s4513_s18 = scalar_lea.vmem %s4512_s11, %s4044_s9  ;;  %v1774_v19 = vsub.s32 3, %v4131_v30 }
 0x660   : > { %v2773_v46 = vld [vmem:[%s4513_s18] ss:$0 sm:$0xff] }
 0x662   : > { %1988 = vmatpush1.bf16.msra.mxu0 %v3226_v18  ;;  %v1758_v18 = vld [vmem:[%s4062_s28] sm:$0xf] }
 0x663   : > { %1989 = vmatprep.subr.bf16.mxu0 %v3234_v21  ;;  %v1763_v20 = vrot.slane %v1758_v18, %v864_v32  ;;  %v1771_v21 = vrot.slane %v1758_v18, %v872_v47  ;;  %v1767_v25 = vrot.slane %v1758_v18, %v868_v31 }
 0x666   : > { %1990 = vmatpush1.bf16.msra.mxu0 %v3232_v23 }
 0x667   : > { %1991 = vmatprep.subr.bf16.mxu0 %v3240_v26  ;;  %v1775_v26 = vrot.slane %v1758_v18, %v1774_v19 }
 0x66a   : > { %1992 = vmatpush1.bf16.msra.mxu0 %v3238_v28 }
 0x66b   : > { %1993 = vmatprep.subr.bf16.mxu0 %v3246_v33 }
 0x66e   : > { %1994 = vmatpush1.bf16.msra.mxu0 %v3244_v35 }
 0x66f   : > { %1995 = vmatprep.subr.bf16.mxu0 %v3252_v37 }
 0x672   : > { %1996 = vmatpush1.bf16.msra.mxu0 %v3250_v39 }
 0x673   : > { %2905 = vmatprep.subr.bf16.mxu0 %v3254_v41 }
 0x6e4   : > { %v1700_v9 = vpop.xlane.xlu0 %1699 }
 0x6e5   : > { %v1702_v10 = vmul.f32 0.0078125, %v1700_v9  ;;  %v3275_v9 = vld [vmem:[%s4076_s8 + $0x10] sm:$0xff]  }
 0x6e7   : > { %v1703_v11 = vsub.f32 %v1696_v62, %v1702_v10  ;;  %v3264_v62 = vld [vmem:[%s4076_s8 + $0xa8] sm:$0xff]   ;;  %v3276_v10 = vld [vmem:[%s4076_s8 + $0x90] sm:$0xff]  }
 0x6e9   : > { %v1704_v12 = vmul.f32 %v1703_v11, %v1703_v11 }
 0x6eb   : > { %1705 = vadd.xlane.f32.xlu1 %v1704_v12  ;;  %v3278_v12 = vld [vmem:[%s4076_s8 + $0xc8] sm:$0xff]  }
 0x774   : > { %v1706_v42 = vpop.xlane.xlu1 %1705 }
 0x775   : > { %v1707_v43 = vmul.f32 0.0078125, %v1706_v42 }
 0x777   : > { %v1708_v44 = vadd.f32 1e-12, %v1707_v43 }
 0x779   : > { %3301 = vrsqrt.f32 %v1708_v44 }
 0x786   : > { %v3302_v45 = vpop.eup %3301 }
 0x787   : > { %v1710_v48 = vmul.f32 %v3302_v45, %v1703_v11  ;;  %v3277_v11 = vld [vmem:[%s4076_s8 + $0x48] sm:$0xff]  }
 0x789   : > { %v1717_v50 = vmul.f32 %v2773_v46, %v1710_v48 }
 0x78b   : > { %v4277_v51 = vadd.f32 %v2774_v49, %v1717_v50 }
 0x78d   : > { %v1725_v55 = vpack.c.bf16 %v4277_v51, %v4277_v51 }
 0x78f   : > { %1973 = vmatmul.mubr.bf16.vlgmr.msra.gmra.mxu1 %v1725_v55  ;;  %2014 = vmatmul.mubr.bf16.vlgmr.msra.gmra.mxu0 %v1725_v55 }
 0x790   : > { %2884 = vmatpush3.bf16.msra.mxu1 %v3255_v53  ;;  %2906 = vmatpush3.bf16.msra.mxu0 %v3256_v54 }
 0x791   : > { %2885 = vmatprep.subr.bf16.mxu1 %v3257_v4  ;;  %2907 = vmatprep.subr.bf16.mxu0 %v3258_v56 }
 0x794   : > { %2886 = vmatpush3.bf16.msra.mxu1 %v3259_v57  ;;  %2908 = vmatpush3.bf16.msra.mxu0 %v3260_v58 }
 0x795   : > { %2887 = vmatprep.subr.bf16.mxu1 %v3261_v59  ;;  %2909 = vmatprep.subr.bf16.mxu0 %v3262_v60 }
 0x798   : > { %2888 = vmatpush3.bf16.msra.mxu1 %v3263_v61  ;;  %2910 = vmatpush3.bf16.msra.mxu0 %v3264_v62 }
 0x799   : > { %2889 = vmatprep.subr.bf16.mxu1 %v3265_v63  ;;  %2911 = vmatprep.subr.bf16.mxu0 %v3266_v0  ;;  %v2807_v0 = vld [vmem:[%s812_s4] ss:$0 sm:$0xff] }
 0x79c   : > { %2890 = vmatpush3.bf16.msra.mxu1 %v3267_v1  ;;  %2912 = vmatpush3.bf16.msra.mxu0 %v3268_v2 }
 0x79d   : > { %2891 = vmatprep.subr.bf16.mxu1 %v3269_v5  ;;  %2913 = vmatprep.subr.bf16.mxu0 %v3270_v6 }
 0x7a0   : > { %2892 = vmatpush3.bf16.msra.mxu1 %v3271_v3  ;;  %2914 = vmatpush3.bf16.msra.mxu0 %v3272_v7 }
 0x7a1   : > { %2893 = vmatprep.subr.bf16.mxu1 %v3273_v8  ;;  %2915 = vmatprep.subr.bf16.mxu0 %v3274_v24 }
 0x7a4   : > { %2894 = vmatpush3.bf16.msra.mxu1 %v3275_v9  ;;  %2916 = vmatpush3.bf16.msra.mxu0 %v3276_v10 }
 0x7a5   : > { %2895 = vmatprep.subr.bf16.mxu1 %v3277_v11  ;;  %2917 = vmatprep.subr.bf16.mxu0 %v3278_v12 }
 0x7a8   : > { %2896 = vmatpush3.bf16.msra.mxu1 %v3279_v13  ;;  %2918 = vmatpush3.bf16.msra.mxu0 %v3280_v14 }
 0x7a9   : > { %2897 = vmatprep.subr.bf16.mxu1 %v3281_v52  ;;  %2919 = vmatprep.subr.bf16.mxu0 %v3282_v15 }
 0x7ac   : > { %2898 = vmatpush3.bf16.msra.mxu1 %v3283_v16  ;;  %2920 = vmatpush3.bf16.msra.mxu0 %v3284_v17 }
 0x84f   : > { %v1974_v22 = vpop.f32.mrf.mxu1  ;;  %v2015_v23 = vpop.f32.mrf.mxu0 }
 0x850   : > { %v1975_v27 = vadd.f32 %v1974_v22, %v1763_v20  ;;  %v2016_v28 = vadd.f32 %v2015_v23, %v1771_v21  ;;  %v2841_v20 = vld [vmem:[%s818_s16] ss:$0 sm:$0xff] }
 0x851   : > { %v1976_v29 = vpop.f32.mrf.mxu1  ;;  %v2017_v33 = vpop.f32.mrf.mxu0 }
 0x852   : > { %v2026_v34 = vmul.f32 0.70710677, %v1975_v27  ;;  %v2028_v35 = vmul.f32 0.70710677, %v2016_v28  ;;  %v1977_v36 = vadd.f32 %v1976_v29, %v1767_v25  ;;  %v2018_v37 = vadd.f32 %v2017_v33, %v1775_v26 }
 0x853   : > { %v1978_v38 = vpop.f32.mrf.mxu1  ;;  %v2019_v39 = vpop.f32.mrf.mxu0  ;;  %v2022_v45 = vmul.f32 0.5, %v1975_v27  ;;  %v2024_v48 = vmul.f32 0.5, %v2016_v28 }
 0x854   : > { %3303 = verf.f32 %v2026_v34  ;;  %v2027_v32 = vmul.f32 0.70710677, %v1977_v36  ;;  %v2029_v41 = vmul.f32 0.70710677, %v2018_v37  ;;  %v2023_v49 = vmul.f32 0.5, %v1977_v36 }
 0x855   : > { %3305 = verf.f32 %v2028_v35  ;;  %v1979_v47 = vpop.f32.mrf.mxu1  ;;  %v2020_v40 = vpop.f32.mrf.mxu0  ;;  %v2025_v54 = vmul.f32 0.5, %v2018_v37 }
 0x856   : > { %3307 = verf.f32 %v2027_v32 }
 0x857   : > { %3309 = verf.f32 %v2029_v41 }
 0x861   : > { %v3304_v30 = vpop.eup %3303 }
 0x862   : > { %v3306_v31 = vpop.eup %3305  ;;  %v2034_v42 = vadd.f32 1.0, %v3304_v30 }
 0x863   : > { %v2036_v43 = vadd.f32 1.0, %v3306_v31  ;;  %v3308_v44 = vpop.eup %3307 }
 0x864   : > { %v3310_v46 = vpop.eup %3309  ;;  %v2035_v50 = vadd.f32 1.0, %v3308_v44  ;;  %v2038_v53 = vmul.f32 %v2034_v42, %v2022_v45 }
 0x865   : > { %v2037_v55 = vadd.f32 1.0, %v3310_v46  ;;  %v2040_v4 = vmul.f32 %v2036_v43, %v2024_v48 }
 0x866   : > { %v2039_v56 = vmul.f32 %v2035_v50, %v2023_v49  ;;  %v2042_v59 = vpack.c.bf16 %v2038_v53, %v2038_v53 }
 0x867   : > { %v2041_v57 = vmul.f32 %v2037_v55, %v2025_v54  ;;  %v2044_v61 = vpack.c.bf16 %v2040_v4, %v2040_v4 }
 0x868   : > { %v2043_v58 = vpack.c.bf16 %v2039_v56, %v2039_v56 }
 0x869   : > { %v2045_v60 = vpack.c.bf16 %v2041_v57, %v2041_v57 }
 0x86a   : > { %2341 = vmatprep.mubr.bf16.mxu1 %v2043_v58 }
 0x86b   : > { %2381 = vmatprep.mubr.bf16.mxu0 %v2045_v60  ;;  %2342 = vmatmul.mubr.bf16.vlgmr.msra.gmra.mxu1 %v2042_v59 }
 0x86c   : > { %2382 = vmatmul.mubr.bf16.vlgmr.msra.gmra.mxu0 %v2044_v61 }
 0x92b   : > { %v2899_v62 = vpop.f32.mrf.mxu1 }
 0x92c   : > { %v2921_v63 = vpop.f32.mrf.mxu0 }
 0x92d   : > { %v2900_v1 = vpop.f32.mrf.mxu1 }
 0x92e   : > { %v2901_v2 = vadd.f32 %v2900_v1, %v2899_v62  ;;  %v2922_v5 = vpop.f32.mrf.mxu0 }
 0x92f   : > { %v2902_v6 = vpop.f32.mrf.mxu1  ;;  %v2923_v7 = vadd.f32 %v2922_v5, %v2921_v63 }
 0x930   : > { %v2344_v3 = vadd.f32 %v2901_v2, %v2807_v0  ;;  %v2924_v8 = vpop.f32.mrf.mxu0 }
 0x931   : > { %v2903_v24 = vpop.f32.mrf.mxu1 }
 0x932   : > { %v2384_v9 = vadd.f32 %v2923_v7, %v2344_v3  ;;  %v2925_v10 = vpop.f32.mrf.mxu0 }
 0x934   : > { %v2389_v11 = vadd.f32 %v2384_v9, %v4277_v51  ;;  %v2840_v51 = vld [vmem:[%s815_s22] ss:$0 sm:$0xff]  ;;  %s3666_s22 = smov [#allocation16]  }
 0x935   : > { %s3513_s11 = sshll.u32 %s3666_s22, 4  ;;  %s3514_s11 = int_to_ptr.vmem [resolvable:$false] %s3513_s11 }
 0x936   : > { %2392 = vadd.xlane.f32.xlu0 %v2389_v11  ;;  %s3515_s9 = scalar_lea.vmem %s3514_s11, 256  ;;  %p3516_p10 = scmp.lt.s32.totalorder %s2433_s10, %s3514_s11 }
 0x937   : > { %p3517_p3 = scmp.lt.s32.totalorder %s3515_s9, %s3509_s20 }
 0x939   : > { %p3518_p6 = por %p3517_p3, %p3516_p10 }
 0x93b   : > { %p3519_p7 = pnand %p3518_p6, %p3512_p1 }
 0x9bf   : > { %v2393_v12 = vpop.xlane.xlu0 %2392 }
 0x9c0   : > { %v2394_v13 = vmul.f32 0.0078125, %v2393_v12 }
 0x9c2   : > { %v2395_v14 = vsub.f32 %v2389_v11, %v2394_v13 }
 0x9c4   : > { %v2396_v52 = vmul.f32 %v2395_v14, %v2395_v14 }
 0x9c6   : > { %2397 = vadd.xlane.f32.xlu0 %v2396_v52 }
 0xa4f   : > { %v2398_v15 = vpop.xlane.xlu0 %2397 }
 0xa50   : > { %v2399_v16 = vmul.f32 0.0078125, %v2398_v15 }
 0xa52   : > { %v2400_v17 = vadd.f32 1e-12, %v2399_v16 }
 0xa54   : > { %3311 = vrsqrt.f32 %v2400_v17 }
 0xa61   : > { %v3312_v18 = vpop.eup %3311 }
 0xa62   : > { %v2402_v19 = vmul.f32 %v3312_v18, %v2395_v14 }
 0xa64   : > { %v2409_v21 = vmul.f32 %v2840_v51, %v2402_v19 }
 0xa66   : > { %v2416_v22 = vadd.f32 %v2841_v20, %v2409_v21 }
 0xa68   : > { %2417 = vst [vmem:[%s4080_s7] sm:$0xff] %v2416_v22 }
 0xa69   : > { %3522 = shalt.err (!%p3519_p7)
}
 0xa6a   : > { %s3523_s16 = scalar_lea.hbm %s2430_s29, 128  ;;  %s3527_s18 = scalar_lea.hbm %s4521_s14, 256 }
 0xa6b   : > { %p3524_p8 = scmp.ne.s32.totalorder %s2430_s29, %s3523_s16  ;;  %p3528_p5 = scmp.lt.s32.totalorder %s2430_s29, %s4521_s14 }
 0xa6c   : > { %p3529_p0 = scmp.lt.s32.totalorder %s3527_s18, %s3523_s16 }
 0xa6d   : > { %p3525_p13 = pnand %p3524_p8, %p3834_p12 }
 0xa6e   : > { %p3530_p11 = por %p3529_p0, %p3528_p5 }
 0xa6f   : > { %p3526_p2 = pneg %p3525_p13 }
 0xa71   : > { %p3531_p4 = pnand %p3530_p11, %p3526_p2 }
 0xa73   : > { %3534 = shalt.err (!%p3531_p4)
}
 0xa74   : > { %3035 = dma.vmem_to_hbm [thread:$0]  (%p3834_p12), %s2433_s10, 128, %s2430_s29, %s2419_s30  }
 0xa75 PF: > { %s4522_s25 = sld [smem:[#allocation31_spill]] }
 0xa76   : > { %s4523_s1 = sld [smem:[#allocation25_spill]] }
 0xa77   : > { %s4524_s28 = sld [smem:[#allocation36_spill]] }
 0xa7b   : > { %p3064_p9 = scmp.ge.s32.totalorder %s4522_s25, 2 }
 0xa7c   : > { %s2444_s5 = sand.u32 1, %s4523_s1  }
 0xa7d   : > { %p4525_p1 = scmp.ne.s32.totalorder %s4524_s28, 0  ;;  %s2445_s27 = scalar_lea.sflag [#allocation6], %s2444_s5 }
 0xa7f   : > { %p3060_p10 = pnand %p3064_p9, %p4525_p1 }
 0xa81   : > { %p3061_p3 = pneg %p3060_p10 }
 0xa83   : > { %3600 = dma.done.wait (%p3061_p3), %s2445_s27, 128  }
 0xa84   : > { %3602 = vsyncadd (%p3061_p3), %s2445_s27, 4294967168  ;;  %s39_s23 = sadd.s32 1, %s4522_s25   ;;  %s4526_s29 = sld [smem:[#allocation23_spill]] }
 0xa85   : > { %p36_p6 = scmp.ge.s32.totalorder %s39_s23, 6   ;;  %s4527_s30 = sld [smem:[#allocation24_spill]] }
 0xa86   : > { %s4528_s15 = sld [smem:[#allocation40_spill]]  ;;  %s4535_s19 = smov %s3637_s21 }
 0xa87   : > { %s4529_s16 = sld [smem:[#allocation26_spill]] }
 0xa88   : > { %s4530_s17 = sld [smem:[#allocation27_spill]] }
 0xa89   : > { %s4531_s18 = sld [smem:[#allocation41_spill]] }
 0xa8a   : > { %s4532_s20 = sld [smem:[#allocation30_spill]] }
 0xa8b   : > { %s4533_s4 = sld [smem:[#allocation38_spill]] }
 0xa8c   : > { %s4534_s22 = sld [smem:[#allocation39_spill]] }
 0xa8d   :  { %38 = sbr.rel (!%p36_p6) target bundleno = 31 (0x1f), region = 218 }
 0xa91   : > { %s4536_s21 = smov %s4533_s4 }
 0xa92   :  { %2450 = vsyncpa [#allocation5], 1 }
 0xa93   :  { %2452 = vsyncpa [#allocation5 + $0x1], 1 }
 0xa94   :  { %2453 = vsyncpa [#allocation8], 1 }
 0xa95   :  { %2455 = vsyncpa [#allocation8 + $0x1], 1 }
 0xa96   :  { %2456 = vsyncpa [#allocation11], 1 }
 0xa97   :  { %2458 = vsyncpa [#allocation11 + $0x1], 1 }
 0xa98   :  { %2459 = vsyncpa [#allocation14], 1 }
 0xa99   :  { %2461 = vsyncpa [#allocation14 + $0x1], 1 }
 0xa9a   :  { %2462 = vsyncpa [#allocation6], 1 }
 0xa9b   :  { %2464 = vsyncpa [#allocation6 + $0x1], 1 }

</bundles_post_ra>
